<compile_context>
chip_gen: v5e
topology: v5e:2x2
jax: 0.10.0
libtpu: 0.0.40
codegen_flags: <defaults>
</compile_context>

<pallas_src>
import jax
import jax.numpy as jnp
from jax.experimental import pallas as pl
from jax.experimental.pallas import tpu as pltpu

C = 32  # channel count is fixed by the CMT module definition


# ----------------------------------------------------------------------------
# Fused Pallas kernel (one batch element per grid step)
# ----------------------------------------------------------------------------
def _cmt_fused_kernel(q_ref, k_ref, qt_ref, smean_ref,
                      w1_ref, b1_ref, w2_ref, b2_ref,
                      wk_ref, bk_ref, wqT_ref, bq_ref,
                      wchn_ref, wspa_ref, b11_ref,
                      chn_out_ref, spa_out_ref):
    """Fused CMT forward for one batch element.

    q_ref, k_ref : (1, C, HW)    query / key, natural (row-major) pixel order
    qt_ref       : (1, 4, C, PP) query patches in torch image_to_patches order
    smean_ref    : (HW, 4)       per-patch mean selector (1/PP one-hot)
    w1 (1,C) b1 (1,1)            channel_conv_1
    w2 (C,C) b2 (C,1)            channel_conv_2
    wk (C,C) bk (C,1)            spatial_key_conv
    wqT (C,C) bq (C,1)           spatial_query_conv (weight pre-transposed)
    wchn (C,C)                   conv11 weight, channel half  w11[:, :C]
    wspa (4,C,4C)                conv11 weight, spatial half, columns permuted
                                 per output-pixel parity (channel scramble folded in)
    b11 (C,1)                    conv11 bias
    chn_out_ref  : (1, C, HW)    w11[:, :C] @ ((1 - sigmoid(rel)) * q) + b11
    spa_out_ref  : (1, 4, C, PP) per-parity spatial half of the fused conv11
    """
    f32 = jnp.float32
    q = q_ref[0]                                                            # (C, HW)
    k = k_ref[0]                                                            # (C, HW)

    # ---------------- channel branch (collapsed to matvecs) ----------------
    ck = jnp.dot(w1_ref[...], k, preferred_element_type=f32) + b1_ref[...]  # (1, HW)
    t = jnp.sum(q * ck, axis=-1, keepdims=True)                             # (C, 1)
    sk = jnp.sum(ck)                                                        # scalar
    rel_c = jnp.dot(w2_ref[...], t, preferred_element_type=f32) + b2_ref[...] * sk
    inv_c = 1.0 - jax.nn.sigmoid(rel_c)                                     # (C, 1)
    chn_out_ref[0] = (jnp.dot(wchn_ref[...], inv_c * q, preferred_element_type=f32)
                      + b11_ref[...])                                       # (C, HW)

    # ---------------- spatial branch (collapsed to matvecs) ----------------
    pm = jnp.dot(k, smean_ref[...], preferred_element_type=f32)             # (C, 4)
    km = jnp.dot(wk_ref[...], pm, preferred_element_type=f32) + bk_ref[...] # (C, 4)
    u = jnp.dot(wqT_ref[...], km, preferred_element_type=f32)               # (C, 4)
    v = jnp.sum(km * bq_ref[...], axis=0, keepdims=True)                    # (1, 4)

    v_blocks = []
    for kp in range(4):                                                     # static unroll
        qk = qt_ref[0, kp]                                                  # (C, PP)
        relk = (jnp.sum(u[:, kp:kp + 1] * qk, axis=0, keepdims=True)
                + v[:, kp:kp + 1])                                          # (1, PP)
        v_blocks.append((1.0 - jax.nn.sigmoid(relk)) * qk)                  # (C, PP)
    vals = jnp.concatenate(v_blocks, axis=0)                                # (4C, PP)

    # fused spatial half of conv11 — channel scramble lives in wspa's columns
    for p in range(4):                                                      # static unroll
        spa_out_ref[0, p] = jnp.dot(wspa_ref[p], vals, preferred_element_type=f32)


# ----------------------------------------------------------------------------
# JAX glue (trace-time constants / layout prep / epilogue)
# ----------------------------------------------------------------------------
def _patches_T(x):
    """(B, C, H, W) -> (B, 4, C, ph*pw) in torch image_to_patches order.

    out[b, k, c, i*pw + j] = x[b, c, pr*ph + j, pc*pw + i],  k = 2*pr + pc.
    """
    B, Cc, H, W = x.shape
    ph, pw = H // 2, W // 2
    t = x.reshape(B, Cc, 2, ph, 2, pw)             # (b, c, pr, r, pc, s)
    t = jnp.transpose(t, (0, 2, 4, 1, 5, 3))       # (b, pr, pc, c, s, r)
    return t.reshape(B, 4, Cc, ph * pw)


def _patch_mean_selector(H, W):
    """(HW, 4) matrix S with S[n, k] = 1/PP if flat pixel n lies in patch k."""
    ph, pw = H // 2, W // 2
    yy = jnp.arange(H)[:, None]
    xx = jnp.arange(W)[None, :]
    pid = (yy // ph) * 2 + (xx // pw)              # (H, W) in {0,1,2,3}
    sel = jax.nn.one_hot(pid.reshape(-1), 4, dtype=jnp.float32)
    return sel / float(ph * pw)


def _permuted_spa_weight(w_spa):
    """Fold the PyTorch channel scramble into the spatial half of conv11.

    w_spa: (C, C) = w11[:, C:], input channel m.  Returns (4, C, 4C) where
    entry [p, o, k*C + c] multiplies the irrelevance-weighted query-patch value
    (patch k, channel c) and contributes to output pixels with parity
    p = 2*(y % 2) + (x % 2).  Column (k, c) feeds parity p iff
    (k*C + c) % 4 == p, via original conv11 input channel C + m with
    m = (k*C + c - p) // 4 — exactly what the view/permute chain does.
    """
    cols = jnp.arange(4 * C)
    k_idx = cols // C
    c_idx = cols % C
    mats = []
    for p in range(4):
        valid = (c_idx % 4) == p                   # (k*C + c) % 4 == p  (C % 4 == 0)
        m_idx = k_idx * (C // 4) + (c_idx - p) // 4
        gathered = w_spa[:, jnp.clip(m_idx, 0, C - 1)]           # (C, 4C)
        mats.append(jnp.where(valid[None, :], gathered, 0.0))
    return jnp.stack(mats, axis=0)                 # (4, C, 4C)


@jax.jit
def cmt_forward(query, key, params):
    B, Cc, H, W = query.shape
    assert Cc == C
    assert H == W and H % 2 == 0, "this implementation assumes square, even spatial dims"
    ph = H // 2
    HW, PP = H * W, ph * ph

    qf = query.reshape(B, C, HW)                   # free reshape (no data movement)
    kf = key.reshape(B, C, HW)
    qt = _patches_T(query)                         # (B, 4, C, PP)

    w1 = params["w1"]
    b1 = params["b1"].reshape(1, 1)
    w2 = params["w2"]
    b2 = params["b2"].reshape(C, 1)
    wk = params["wk"]
    bk = params["bk"].reshape(C, 1)
    wqT = params["wq"].T
    bq = params["bq"].reshape(C, 1)
    w11 = params["w11"]
    b11 = params["b11"].reshape(C, 1)
    w_chn = w11[:, :C]
    w_spa = _permuted_spa_weight(w11[:, C:])       # (4, C, 4C)
    smean = _patch_mean_selector(H, W)             # (HW, 4)

    img_map = lambda b: (b, 0, 0)
    pat_map = lambda b: (b, 0, 0, 0)
    w2d = lambda b: (0, 0)
    w3d = lambda b: (0, 0, 0)

    chn_out, spa_out = pl.pallas_call(
        _cmt_fused_kernel,
        out_shape=(jax.ShapeDtypeStruct((B, C, HW), jnp.float32),
                   jax.ShapeDtypeStruct((B, 4, C, PP), jnp.float32)),
        grid=(B,),
        in_specs=[
            pl.BlockSpec((1, C, HW), img_map),                       # query (natural)
            pl.BlockSpec((1, C, HW), img_map),                       # key   (natural)
            pl.BlockSpec((1, 4, C, PP), pat_map),                    # query patches
            pl.BlockSpec((HW, 4), w2d),                              # patch-mean selector
            pl.BlockSpec((1, C), w2d), pl.BlockSpec((1, 1), w2d),    # w1, b1
            pl.BlockSpec((C, C), w2d), pl.BlockSpec((C, 1), w2d),    # w2, b2
            pl.BlockSpec((C, C), w2d), pl.BlockSpec((C, 1), w2d),    # wk, bk
            pl.BlockSpec((C, C), w2d), pl.BlockSpec((C, 1), w2d),    # wq^T, bq
            pl.BlockSpec((C, C), w2d),                               # w11[:, :C]
            pl.BlockSpec((4, C, 4 * C), w3d),                        # permuted w11[:, C:]
            pl.BlockSpec((C, 1), w2d),                               # b11
        ],
        out_specs=(pl.BlockSpec((1, C, HW), img_map),
                   pl.BlockSpec((1, 4, C, PP), pat_map)),
        compiler_params=pltpu.CompilerParams(dimension_semantics=("parallel",)),
    )(qf, kf, qt, smean, w1, b1, w2, b2, wk, bk, wqT, bq, w_chn, w_spa, b11)

    # Single remaining XLA op: interleave the spatial half back into image
    # layout (the module's inherent pixel scramble) and add to the channel half;
    # XLA fuses the transpose with the add.
    s = spa_out.reshape(B, 2, 2, C, ph, ph)        # (b, n1, n2, o, i, j)
    s = jnp.transpose(s, (0, 3, 4, 1, 5, 2))       # (b, o, i, n1, j, n2)
    spa_img = s.reshape(B, C, H, W)                # pixel (2i+n1, 2j+n2)
    return chn_out.reshape(B, C, H, W) + spa_img


# ----------------------------------------------------------------------------
# Pure-JAX reference (direct transcription of the PyTorch forward)
# ----------------------------------------------------------------------------
def _conv1x1(x, w, b):
    return jnp.einsum("oi,bihw->bohw", w, x) + b[None, :, None, None]


def _image_to_patches_ref(x):
    B, Cc, H, W = x.shape
    ph, pw = H // 2, W // 2
    p = x.reshape(B, Cc, 2, ph, 2, pw)
    p = jnp.transpose(p, (0, 1, 2, 4, 3, 5))       # torch unfold.unfold
    p = jnp.transpose(p, (0, 1, 2, 3, 5, 4))       # permute(0,1,2,3,5,4)
    return p.reshape(B, Cc, 4, ph, pw)


def cmt_reference(query, key, P):
    B, Cc, H, W = query.shape
    chn_key = _conv1x1(key, P["w1"], P["b1"])
    chn_query = _conv1x1(query, P["w2"], P["b2"])
    cq = chn_query.reshape(B, Cc, H * W)
    ck = jnp.transpose(chn_key.reshape(B, 1, H * W), (0, 2, 1))
    rel = jnp.einsum("bcn,bnk->bck", cq, ck)
    inv = (1.0 - jax.nn.sigmoid(rel))[:, :, :, None]
    chn_value_final = inv * query

    spa_query = _conv1x1(query, P["wq"], P["bq"])
    spa_key = _conv1x1(key, P["wk"], P["bk"])
    bqp = _image_to_patches_ref(query)
    sqp = _image_to_patches_ref(spa_query)
    skp = _image_to_patches_ref(spa_key)
    _, C2, PN, Hh, Ww = sqp.shape
    bqp_u = jnp.transpose(bqp, (0, 2, 1, 3, 4))
    sqp_u = jnp.transpose(sqp, (0, 2, 1, 3, 4))
    skp_u = jnp.transpose(skp, (0, 2, 1, 3, 4)).reshape(B, PN, C2, Hh * Ww)
    skp_m = jnp.mean(skp_u, axis=3, keepdims=True)
    i_vals = []
    for i in range(4):
        sq_i = sqp_u[:, i].reshape(B, C2, Hh * Ww)
        bq_i = bqp_u[:, i]
        sk_j = jnp.transpose(skp_m[:, i], (0, 2, 1))
        relm = jnp.einsum("bkc,bcn->bkn", sk_j, sq_i)
        irr = (1.0 - jax.nn.sigmoid(relm)).reshape(B, 1, Hh, Ww)
        i_vals.append(irr * bq_i)
    ivt = jnp.concatenate(i_vals, axis=1)
    Bx, Cx, Hx, Wx = ivt.shape
    s = ivt.reshape(Bx, 32, 4, Hx, Wx).reshape(Bx, 32, 2, 2, Hx, Wx)
    s = jnp.transpose(s, (0, 1, 4, 2, 5, 3))
    spa_value_final = s.reshape(Bx, 32, Hx * 2, Wx * 2)
    cat = jnp.concatenate([chn_value_final, spa_value_final], axis=1)
    return _conv1x1(cat, P["w11"], P["b11"])


# ----------------------------------------------------------------------------
def _init_params(key):
    ks = jax.random.split(key, 10)
    s = 0.1
    return {
        "w1": s * jax.random.normal(ks[0], (1, C), jnp.float32),
        "b1": s * jax.random.normal(ks[1], (1,), jnp.float32),
        "w2": s * jax.random.normal(ks[2], (C, C), jnp.float32),
        "b2": s * jax.random.normal(ks[3], (C,), jnp.float32),
        "wq": s * jax.random.normal(ks[4], (C, C), jnp.float32),
        "bq": s * jax.random.normal(ks[5], (C,), jnp.float32),
        "wk": s * jax.random.normal(ks[6], (C, C), jnp.float32),
        "bk": s * jax.random.normal(ks[7], (C,), jnp.float32),
        "w11": s * jax.random.normal(ks[8], (C, 2 * C), jnp.float32),
        "b11": s * jax.random.normal(ks[9], (C,), jnp.float32),
    }


if __name__ == "__main__":
    root = jax.random.PRNGKey(0)
    kq, kk, kp = jax.random.split(root, 3)
    B, H, W = 2, 16, 16
    query = jax.random.normal(kq, (B, C, H, W), jnp.float32)
    key = jax.random.normal(kk, (B, C, H, W), jnp.float32)
    params = _init_params(kp)

    out = jax.block_until_ready(cmt_forward(query, key, params))
    assert out.shape == (B, C, H, W), out.shape

    ref = jax.block_until_ready(cmt_reference(query, key, params))
    max_err = float(jnp.max(jnp.abs(out - ref)))
    assert jnp.allclose(out, ref, atol=2e-3, rtol=2e-3), max_err

    print("KERNEL_OK")
</pallas_src>

<mosaic_0001>
module attributes {stable_mosaic.version = 11 : i64} {
  func.func @_cmt_fused_kernel(%arg0: i32, %arg1: memref<1x32x256xf32, #tpu.memory_space<vmem>>, %arg2: memref<1x32x256xf32, #tpu.memory_space<vmem>>, %arg3: memref<1x4x32x64xf32, #tpu.memory_space<vmem>>, %arg4: memref<256x4xf32, #tpu.memory_space<vmem>>, %arg5: memref<1x32xf32, #tpu.memory_space<vmem>>, %arg6: memref<1x1xf32, #tpu.memory_space<vmem>>, %arg7: memref<32x32xf32, #tpu.memory_space<vmem>>, %arg8: memref<32x1xf32, #tpu.memory_space<vmem>>, %arg9: memref<32x32xf32, #tpu.memory_space<vmem>>, %arg10: memref<32x1xf32, #tpu.memory_space<vmem>>, %arg11: memref<32x32xf32, #tpu.memory_space<vmem>>, %arg12: memref<32x1xf32, #tpu.memory_space<vmem>>, %arg13: memref<32x32xf32, #tpu.memory_space<vmem>>, %arg14: memref<4x32x128xf32, #tpu.memory_space<vmem>>, %arg15: memref<32x1xf32, #tpu.memory_space<vmem>>, %arg16: memref<1x32x256xf32, #tpu.memory_space<vmem>>, %arg17: memref<1x4x32x64xf32, #tpu.memory_space<vmem>>) attributes {dimension_semantics = [#tpu.dimension_semantics<parallel>], iteration_bounds = array<i64: 2>, scalar_prefetch = 0 : i64, scratch_operands = 0 : i64, tpu.core_type = #tpu.core_type<tc>, window_params = [{transform_indices = @transform_0, window_bounds = array<i64: 1, 32, 256>}, {transform_indices = @transform_1, window_bounds = array<i64: 1, 32, 256>}, {transform_indices = @transform_2, window_bounds = array<i64: 1, 4, 32, 64>}, {pipeline_mode = #tpu.pipeline_mode<synchronous>, transform_indices = @transform_3, window_bounds = array<i64: 256, 4>}, {pipeline_mode = #tpu.pipeline_mode<synchronous>, transform_indices = @transform_4, window_bounds = array<i64: 1, 32>}, {pipeline_mode = #tpu.pipeline_mode<synchronous>, transform_indices = @transform_5, window_bounds = array<i64: 1, 1>}, {pipeline_mode = #tpu.pipeline_mode<synchronous>, transform_indices = @transform_6, window_bounds = array<i64: 32, 32>}, {pipeline_mode = #tpu.pipeline_mode<synchronous>, transform_indices = @transform_7, window_bounds = array<i64: 32, 1>}, {pipeline_mode = #tpu.pipeline_mode<synchronous>, transform_indices = @transform_8, window_bounds = array<i64: 32, 32>}, {pipeline_mode = #tpu.pipeline_mode<synchronous>, transform_indices = @transform_9, window_bounds = array<i64: 32, 1>}, {pipeline_mode = #tpu.pipeline_mode<synchronous>, transform_indices = @transform_10, window_bounds = array<i64: 32, 32>}, {pipeline_mode = #tpu.pipeline_mode<synchronous>, transform_indices = @transform_11, window_bounds = array<i64: 32, 1>}, {pipeline_mode = #tpu.pipeline_mode<synchronous>, transform_indices = @transform_12, window_bounds = array<i64: 32, 32>}, {pipeline_mode = #tpu.pipeline_mode<synchronous>, transform_indices = @transform_13, window_bounds = array<i64: 4, 32, 128>}, {pipeline_mode = #tpu.pipeline_mode<synchronous>, transform_indices = @transform_14, window_bounds = array<i64: 32, 1>}, {transform_indices = @transform_15, window_bounds = array<i64: 1, 32, 256>}, {transform_indices = @transform_16, window_bounds = array<i64: 1, 4, 32, 64>}]} {
    %c0 = arith.constant 0 : index
    %c0_0 = arith.constant 0 : index
    %c0_1 = arith.constant 0 : index
    %0 = vector.load %arg1[%c0, %c0_0, %c0_1] : memref<1x32x256xf32, #tpu.memory_space<vmem>>, vector<1x32x256xf32>
    %1 = vector.shape_cast %0 : vector<1x32x256xf32> to vector<32x256xf32>
    %c0_2 = arith.constant 0 : index
    %c0_3 = arith.constant 0 : index
    %c0_4 = arith.constant 0 : index
    %2 = vector.load %arg2[%c0_2, %c0_3, %c0_4] : memref<1x32x256xf32, #tpu.memory_space<vmem>>, vector<1x32x256xf32>
    %3 = vector.shape_cast %2 : vector<1x32x256xf32> to vector<32x256xf32>
    %c0_5 = arith.constant 0 : index
    %c0_6 = arith.constant 0 : index
    %4 = vector.load %arg5[%c0_5, %c0_6] : memref<1x32xf32, #tpu.memory_space<vmem>>, vector<1x32xf32>
    %cst = arith.constant dense<0.000000e+00> : vector<1x256xf32>
    %5 = tpu.matmul %4, %3, %cst {dimension_numbers = #tpu.dot_dimension_numbers<[1], [0], [0], [1], [0, 0, 1, 1], [], []>} : vector<1x32xf32>, vector<32x256xf32>, vector<1x256xf32> -> vector<1x256xf32>
    %c0_7 = arith.constant 0 : index
    %c0_8 = arith.constant 0 : index
    %6 = vector.load %arg6[%c0_7, %c0_8] : memref<1x1xf32, #tpu.memory_space<vmem>>, vector<1x1xf32>
    %7 = vector.broadcast %6 : vector<1x1xf32> to vector<1x256xf32>
    %8 = arith.addf %5, %7 : vector<1x256xf32>
    %9 = vector.broadcast %8 : vector<1x256xf32> to vector<32x256xf32>
    %10 = arith.mulf %1, %9 : vector<32x256xf32>
    %cst_9 = arith.constant dense<0.000000e+00> : vector<32xf32>
    %11 = vector.multi_reduction <add>, %10, %cst_9 [1] : vector<32x256xf32> to vector<32xf32>
    %12 = vector.shape_cast %11 : vector<32xf32> to vector<32x1xf32>
    %13 = vector.shape_cast %8 : vector<1x256xf32> to vector<1x1x256xf32>
    %cst_10 = arith.constant dense<0.000000e+00> : vector<1xf32>
    %14 = vector.multi_reduction <add>, %13, %cst_10 [1, 2] : vector<1x1x256xf32> to vector<1xf32>
    %15 = vector.shape_cast %14 : vector<1xf32> to vector<1x1x1xf32>
    %16 = vector.extract %15[0, 0, 0] : f32 from vector<1x1x1xf32>
    %c0_11 = arith.constant 0 : index
    %c0_12 = arith.constant 0 : index
    %17 = vector.load %arg7[%c0_11, %c0_12] : memref<32x32xf32, #tpu.memory_space<vmem>>, vector<32x32xf32>
    %cst_13 = arith.constant dense<0.000000e+00> : vector<32x1xf32>
    %18 = tpu.matmul %17, %12, %cst_13 {dimension_numbers = #tpu.dot_dimension_numbers<[1], [0], [0], [1], [0, 0, 1, 1], [], []>} : vector<32x32xf32>, vector<32x1xf32>, vector<32x1xf32> -> vector<32x1xf32>
    %c0_14 = arith.constant 0 : index
    %c0_15 = arith.constant 0 : index
    %19 = vector.load %arg8[%c0_14, %c0_15] : memref<32x1xf32, #tpu.memory_space<vmem>>, vector<32x1xf32>
    %20 = vector.broadcast %16 : f32 to vector<32x1xf32>
    %21 = arith.mulf %19, %20 : vector<32x1xf32>
    %22 = arith.addf %18, %21 : vector<32x1xf32>
    %23 = arith.negf %22 : vector<32x1xf32>
    %24 = math.exp %23 : vector<32x1xf32>
    %cst_16 = arith.constant 1.000000e+00 : f32
    %25 = vector.broadcast %cst_16 : f32 to vector<32x1xf32>
    %26 = arith.addf %25, %24 : vector<32x1xf32>
    %27 = arith.divf %25, %26 : vector<32x1xf32>
    %cst_17 = arith.constant 1.000000e+00 : f32
    %28 = vector.broadcast %cst_17 : f32 to vector<32x1xf32>
    %29 = arith.subf %28, %27 : vector<32x1xf32>
    %c0_18 = arith.constant 0 : index
    %c0_19 = arith.constant 0 : index
    %30 = vector.load %arg13[%c0_18, %c0_19] : memref<32x32xf32, #tpu.memory_space<vmem>>, vector<32x32xf32>
    %31 = vector.broadcast %29 : vector<32x1xf32> to vector<32x256xf32>
    %32 = arith.mulf %31, %1 : vector<32x256xf32>
    %cst_20 = arith.constant dense<0.000000e+00> : vector<32x256xf32>
    %33 = tpu.matmul %30, %32, %cst_20 {dimension_numbers = #tpu.dot_dimension_numbers<[1], [0], [0], [1], [0, 0, 1, 1], [], []>} : vector<32x32xf32>, vector<32x256xf32>, vector<32x256xf32> -> vector<32x256xf32>
    %c0_21 = arith.constant 0 : index
    %c0_22 = arith.constant 0 : index
    %34 = vector.load %arg15[%c0_21, %c0_22] : memref<32x1xf32, #tpu.memory_space<vmem>>, vector<32x1xf32>
    %35 = vector.broadcast %34 : vector<32x1xf32> to vector<32x256xf32>
    %36 = arith.addf %33, %35 : vector<32x256xf32>
    %c0_23 = arith.constant 0 : index
    %c0_24 = arith.constant 0 : index
    %c0_25 = arith.constant 0 : index
    %37 = vector.load %arg16[%c0_23, %c0_24, %c0_25] : memref<1x32x256xf32, #tpu.memory_space<vmem>>, vector<1x32x256xf32>
    %38 = vector.shape_cast %37 : vector<1x32x256xf32> to vector<32x256xf32>
    %39 = vector.shape_cast %36 : vector<32x256xf32> to vector<1x32x256xf32>
    tpu.vector_store %arg16[%c0_23, %c0_24, %c0_25], %39 {strides = array<i32>} : memref<1x32x256xf32, #tpu.memory_space<vmem>>, vector<1x32x256xf32>,
    %c0_26 = arith.constant 0 : index
    %c0_27 = arith.constant 0 : index
    %40 = vector.load %arg4[%c0_26, %c0_27] : memref<256x4xf32, #tpu.memory_space<vmem>>, vector<256x4xf32>
    %cst_28 = arith.constant dense<0.000000e+00> : vector<32x4xf32>
    %41 = tpu.matmul %3, %40, %cst_28 {dimension_numbers = #tpu.dot_dimension_numbers<[1], [0], [0], [1], [0, 0, 1, 1], [], []>} : vector<32x256xf32>, vector<256x4xf32>, vector<32x4xf32> -> vector<32x4xf32>
    %c0_29 = arith.constant 0 : index
    %c0_30 = arith.constant 0 : index
    %42 = vector.load %arg9[%c0_29, %c0_30] : memref<32x32xf32, #tpu.memory_space<vmem>>, vector<32x32xf32>
    %cst_31 = arith.constant dense<0.000000e+00> : vector<32x4xf32>
    %43 = tpu.matmul %42, %41, %cst_31 {dimension_numbers = #tpu.dot_dimension_numbers<[1], [0], [0], [1], [0, 0, 1, 1], [], []>} : vector<32x32xf32>, vector<32x4xf32>, vector<32x4xf32> -> vector<32x4xf32>
    %c0_32 = arith.constant 0 : index
    %c0_33 = arith.constant 0 : index
    %44 = vector.load %arg10[%c0_32, %c0_33] : memref<32x1xf32, #tpu.memory_space<vmem>>, vector<32x1xf32>
    %45 = vector.broadcast %44 : vector<32x1xf32> to vector<32x4xf32>
    %46 = arith.addf %43, %45 : vector<32x4xf32>
    %c0_34 = arith.constant 0 : index
    %c0_35 = arith.constant 0 : index
    %47 = vector.load %arg11[%c0_34, %c0_35] : memref<32x32xf32, #tpu.memory_space<vmem>>, vector<32x32xf32>
    %cst_36 = arith.constant dense<0.000000e+00> : vector<32x4xf32>
    %48 = tpu.matmul %47, %46, %cst_36 {dimension_numbers = #tpu.dot_dimension_numbers<[1], [0], [0], [1], [0, 0, 1, 1], [], []>} : vector<32x32xf32>, vector<32x4xf32>, vector<32x4xf32> -> vector<32x4xf32>
    %c0_37 = arith.constant 0 : index
    %c0_38 = arith.constant 0 : index
    %49 = vector.load %arg12[%c0_37, %c0_38] : memref<32x1xf32, #tpu.memory_space<vmem>>, vector<32x1xf32>
    %50 = vector.broadcast %49 : vector<32x1xf32> to vector<32x4xf32>
    %51 = arith.mulf %46, %50 : vector<32x4xf32>
    %cst_39 = arith.constant dense<0.000000e+00> : vector<4xf32>
    %52 = vector.multi_reduction <add>, %51, %cst_39 [0] : vector<32x4xf32> to vector<4xf32>
    %53 = vector.shape_cast %52 : vector<4xf32> to vector<1x4xf32>
    %c0_40 = arith.constant 0 : index
    %c0_41 = arith.constant 0 : index
    %c0_42 = arith.constant 0 : index
    %c0_43 = arith.constant 0 : index
    %54 = vector.load %arg3[%c0_40, %c0_41, %c0_42, %c0_43] : memref<1x4x32x64xf32, #tpu.memory_space<vmem>>, vector<1x1x32x64xf32>
    %55 = vector.shape_cast %54 : vector<1x1x32x64xf32> to vector<32x64xf32>
    %56 = vector.extract_strided_slice %48 {offsets = [0, 0], sizes = [32, 1], strides = [1, 1]} : vector<32x4xf32> to vector<32x1xf32>
    %57 = vector.broadcast %56 : vector<32x1xf32> to vector<32x64xf32>
    %58 = arith.mulf %57, %55 : vector<32x64xf32>
    %cst_44 = arith.constant dense<0.000000e+00> : vector<64xf32>
    %59 = vector.multi_reduction <add>, %58, %cst_44 [0] : vector<32x64xf32> to vector<64xf32>
    %60 = vector.shape_cast %59 : vector<64xf32> to vector<1x64xf32>
    %61 = vector.extract_strided_slice %53 {offsets = [0, 0], sizes = [1, 1], strides = [1, 1]} : vector<1x4xf32> to vector<1x1xf32>
    %62 = vector.broadcast %61 : vector<1x1xf32> to vector<1x64xf32>
    %63 = arith.addf %60, %62 : vector<1x64xf32>
    %64 = arith.negf %63 : vector<1x64xf32>
    %65 = math.exp %64 : vector<1x64xf32>
    %cst_45 = arith.constant 1.000000e+00 : f32
    %66 = vector.broadcast %cst_45 : f32 to vector<1x64xf32>
    %67 = arith.addf %66, %65 : vector<1x64xf32>
    %68 = arith.divf %66, %67 : vector<1x64xf32>
    %cst_46 = arith.constant 1.000000e+00 : f32
    %69 = vector.broadcast %cst_46 : f32 to vector<1x64xf32>
    %70 = arith.subf %69, %68 : vector<1x64xf32>
    %71 = vector.broadcast %70 : vector<1x64xf32> to vector<32x64xf32>
    %72 = arith.mulf %71, %55 : vector<32x64xf32>
    %c0_47 = arith.constant 0 : index
    %c1 = arith.constant 1 : index
    %c0_48 = arith.constant 0 : index
    %c0_49 = arith.constant 0 : index
    %73 = vector.load %arg3[%c0_47, %c1, %c0_48, %c0_49] : memref<1x4x32x64xf32, #tpu.memory_space<vmem>>, vector<1x1x32x64xf32>
    %74 = vector.shape_cast %73 : vector<1x1x32x64xf32> to vector<32x64xf32>
    %75 = vector.extract_strided_slice %48 {offsets = [0, 1], sizes = [32, 1], strides = [1, 1]} : vector<32x4xf32> to vector<32x1xf32>
    %76 = vector.broadcast %75 : vector<32x1xf32> to vector<32x64xf32>
    %77 = arith.mulf %76, %74 : vector<32x64xf32>
    %cst_50 = arith.constant dense<0.000000e+00> : vector<64xf32>
    %78 = vector.multi_reduction <add>, %77, %cst_50 [0] : vector<32x64xf32> to vector<64xf32>
    %79 = vector.shape_cast %78 : vector<64xf32> to vector<1x64xf32>
    %80 = vector.extract_strided_slice %53 {offsets = [0, 1], sizes = [1, 1], strides = [1, 1]} : vector<1x4xf32> to vector<1x1xf32>
    %81 = vector.broadcast %80 : vector<1x1xf32> to vector<1x64xf32>
    %82 = arith.addf %79, %81 : vector<1x64xf32>
    %83 = arith.negf %82 : vector<1x64xf32>
    %84 = math.exp %83 : vector<1x64xf32>
    %cst_51 = arith.constant 1.000000e+00 : f32
    %85 = vector.broadcast %cst_51 : f32 to vector<1x64xf32>
    %86 = arith.addf %85, %84 : vector<1x64xf32>
    %87 = arith.divf %85, %86 : vector<1x64xf32>
    %cst_52 = arith.constant 1.000000e+00 : f32
    %88 = vector.broadcast %cst_52 : f32 to vector<1x64xf32>
    %89 = arith.subf %88, %87 : vector<1x64xf32>
    %90 = vector.broadcast %89 : vector<1x64xf32> to vector<32x64xf32>
    %91 = arith.mulf %90, %74 : vector<32x64xf32>
    %c0_53 = arith.constant 0 : index
    %c2 = arith.constant 2 : index
    %c0_54 = arith.constant 0 : index
    %c0_55 = arith.constant 0 : index
    %92 = vector.load %arg3[%c0_53, %c2, %c0_54, %c0_55] : memref<1x4x32x64xf32, #tpu.memory_space<vmem>>, vector<1x1x32x64xf32>
    %93 = vector.shape_cast %92 : vector<1x1x32x64xf32> to vector<32x64xf32>
    %94 = vector.extract_strided_slice %48 {offsets = [0, 2], sizes = [32, 1], strides = [1, 1]} : vector<32x4xf32> to vector<32x1xf32>
    %95 = vector.broadcast %94 : vector<32x1xf32> to vector<32x64xf32>
    %96 = arith.mulf %95, %93 : vector<32x64xf32>
    %cst_56 = arith.constant dense<0.000000e+00> : vector<64xf32>
    %97 = vector.multi_reduction <add>, %96, %cst_56 [0] : vector<32x64xf32> to vector<64xf32>
    %98 = vector.shape_cast %97 : vector<64xf32> to vector<1x64xf32>
    %99 = vector.extract_strided_slice %53 {offsets = [0, 2], sizes = [1, 1], strides = [1, 1]} : vector<1x4xf32> to vector<1x1xf32>
    %100 = vector.broadcast %99 : vector<1x1xf32> to vector<1x64xf32>
    %101 = arith.addf %98, %100 : vector<1x64xf32>
    %102 = arith.negf %101 : vector<1x64xf32>
    %103 = math.exp %102 : vector<1x64xf32>
    %cst_57 = arith.constant 1.000000e+00 : f32
    %104 = vector.broadcast %cst_57 : f32 to vector<1x64xf32>
    %105 = arith.addf %104, %103 : vector<1x64xf32>
    %106 = arith.divf %104, %105 : vector<1x64xf32>
    %cst_58 = arith.constant 1.000000e+00 : f32
    %107 = vector.broadcast %cst_58 : f32 to vector<1x64xf32>
    %108 = arith.subf %107, %106 : vector<1x64xf32>
    %109 = vector.broadcast %108 : vector<1x64xf32> to vector<32x64xf32>
    %110 = arith.mulf %109, %93 : vector<32x64xf32>
    %c0_59 = arith.constant 0 : index
    %c3 = arith.constant 3 : index
    %c0_60 = arith.constant 0 : index
    %c0_61 = arith.constant 0 : index
    %111 = vector.load %arg3[%c0_59, %c3, %c0_60, %c0_61] : memref<1x4x32x64xf32, #tpu.memory_space<vmem>>, vector<1x1x32x64xf32>
    %112 = vector.shape_cast %111 : vector<1x1x32x64xf32> to vector<32x64xf32>
    %113 = vector.extract_strided_slice %48 {offsets = [0, 3], sizes = [32, 1], strides = [1, 1]} : vector<32x4xf32> to vector<32x1xf32>
    %114 = vector.broadcast %113 : vector<32x1xf32> to vector<32x64xf32>
    %115 = arith.mulf %114, %112 : vector<32x64xf32>
    %cst_62 = arith.constant dense<0.000000e+00> : vector<64xf32>
    %116 = vector.multi_reduction <add>, %115, %cst_62 [0] : vector<32x64xf32> to vector<64xf32>
    %117 = vector.shape_cast %116 : vector<64xf32> to vector<1x64xf32>
    %118 = vector.extract_strided_slice %53 {offsets = [0, 3], sizes = [1, 1], strides = [1, 1]} : vector<1x4xf32> to vector<1x1xf32>
    %119 = vector.broadcast %118 : vector<1x1xf32> to vector<1x64xf32>
    %120 = arith.addf %117, %119 : vector<1x64xf32>
    %121 = arith.negf %120 : vector<1x64xf32>
    %122 = math.exp %121 : vector<1x64xf32>
    %cst_63 = arith.constant 1.000000e+00 : f32
    %123 = vector.broadcast %cst_63 : f32 to vector<1x64xf32>
    %124 = arith.addf %123, %122 : vector<1x64xf32>
    %125 = arith.divf %123, %124 : vector<1x64xf32>
    %cst_64 = arith.constant 1.000000e+00 : f32
    %126 = vector.broadcast %cst_64 : f32 to vector<1x64xf32>
    %127 = arith.subf %126, %125 : vector<1x64xf32>
    %128 = vector.broadcast %127 : vector<1x64xf32> to vector<32x64xf32>
    %129 = arith.mulf %128, %112 : vector<32x64xf32>
    %130 = tpu.concatenate %72, %91, %110, %129 in 0 : vector<32x64xf32>, vector<32x64xf32>, vector<32x64xf32>, vector<32x64xf32> -> vector<128x64xf32>
    %c0_65 = arith.constant 0 : index
    %c0_66 = arith.constant 0 : index
    %c0_67 = arith.constant 0 : index
    %131 = vector.load %arg14[%c0_65, %c0_66, %c0_67] : memref<4x32x128xf32, #tpu.memory_space<vmem>>, vector<1x32x128xf32>
    %132 = vector.shape_cast %131 : vector<1x32x128xf32> to vector<32x128xf32>
    %cst_68 = arith.constant dense<0.000000e+00> : vector<32x64xf32>
    %133 = tpu.matmul %132, %130, %cst_68 {dimension_numbers = #tpu.dot_dimension_numbers<[1], [0], [0], [1], [0, 0, 1, 1], [], []>} : vector<32x128xf32>, vector<128x64xf32>, vector<32x64xf32> -> vector<32x64xf32>
    %c0_69 = arith.constant 0 : index
    %c0_70 = arith.constant 0 : index
    %c0_71 = arith.constant 0 : index
    %c0_72 = arith.constant 0 : index
    %134 = vector.load %arg17[%c0_69, %c0_70, %c0_71, %c0_72] : memref<1x4x32x64xf32, #tpu.memory_space<vmem>>, vector<1x1x32x64xf32>
    %135 = vector.shape_cast %134 : vector<1x1x32x64xf32> to vector<32x64xf32>
    %136 = vector.shape_cast %133 : vector<32x64xf32> to vector<1x1x32x64xf32>
    tpu.vector_store %arg17[%c0_69, %c0_70, %c0_71, %c0_72], %136 {strides = array<i32>} : memref<1x4x32x64xf32, #tpu.memory_space<vmem>>, vector<1x1x32x64xf32>,
    %c1_73 = arith.constant 1 : index
    %c0_74 = arith.constant 0 : index
    %c0_75 = arith.constant 0 : index
    %137 = vector.load %arg14[%c1_73, %c0_74, %c0_75] : memref<4x32x128xf32, #tpu.memory_space<vmem>>, vector<1x32x128xf32>
    %138 = vector.shape_cast %137 : vector<1x32x128xf32> to vector<32x128xf32>
    %cst_76 = arith.constant dense<0.000000e+00> : vector<32x64xf32>
    %139 = tpu.matmul %138, %130, %cst_76 {dimension_numbers = #tpu.dot_dimension_numbers<[1], [0], [0], [1], [0, 0, 1, 1], [], []>} : vector<32x128xf32>, vector<128x64xf32>, vector<32x64xf32> -> vector<32x64xf32>
    %c0_77 = arith.constant 0 : index
    %c1_78 = arith.constant 1 : index
    %c0_79 = arith.constant 0 : index
    %c0_80 = arith.constant 0 : index
    %140 = vector.load %arg17[%c0_77, %c1_78, %c0_79, %c0_80] : memref<1x4x32x64xf32, #tpu.memory_space<vmem>>, vector<1x1x32x64xf32>
    %141 = vector.shape_cast %140 : vector<1x1x32x64xf32> to vector<32x64xf32>
    %142 = vector.shape_cast %139 : vector<32x64xf32> to vector<1x1x32x64xf32>
    tpu.vector_store %arg17[%c0_77, %c1_78, %c0_79, %c0_80], %142 {strides = array<i32>} : memref<1x4x32x64xf32, #tpu.memory_space<vmem>>, vector<1x1x32x64xf32>,
    %c2_81 = arith.constant 2 : index
    %c0_82 = arith.constant 0 : index
    %c0_83 = arith.constant 0 : index
    %143 = vector.load %arg14[%c2_81, %c0_82, %c0_83] : memref<4x32x128xf32, #tpu.memory_space<vmem>>, vector<1x32x128xf32>
    %144 = vector.shape_cast %143 : vector<1x32x128xf32> to vector<32x128xf32>
    %cst_84 = arith.constant dense<0.000000e+00> : vector<32x64xf32>
    %145 = tpu.matmul %144, %130, %cst_84 {dimension_numbers = #tpu.dot_dimension_numbers<[1], [0], [0], [1], [0, 0, 1, 1], [], []>} : vector<32x128xf32>, vector<128x64xf32>, vector<32x64xf32> -> vector<32x64xf32>
    %c0_85 = arith.constant 0 : index
    %c2_86 = arith.constant 2 : index
    %c0_87 = arith.constant 0 : index
    %c0_88 = arith.constant 0 : index
    %146 = vector.load %arg17[%c0_85, %c2_86, %c0_87, %c0_88] : memref<1x4x32x64xf32, #tpu.memory_space<vmem>>, vector<1x1x32x64xf32>
    %147 = vector.shape_cast %146 : vector<1x1x32x64xf32> to vector<32x64xf32>
    %148 = vector.shape_cast %145 : vector<32x64xf32> to vector<1x1x32x64xf32>
    tpu.vector_store %arg17[%c0_85, %c2_86, %c0_87, %c0_88], %148 {strides = array<i32>} : memref<1x4x32x64xf32, #tpu.memory_space<vmem>>, vector<1x1x32x64xf32>,
    %c3_89 = arith.constant 3 : index
    %c0_90 = arith.constant 0 : index
    %c0_91 = arith.constant 0 : index
    %149 = vector.load %arg14[%c3_89, %c0_90, %c0_91] : memref<4x32x128xf32, #tpu.memory_space<vmem>>, vector<1x32x128xf32>
    %150 = vector.shape_cast %149 : vector<1x32x128xf32> to vector<32x128xf32>
    %cst_92 = arith.constant dense<0.000000e+00> : vector<32x64xf32>
    %151 = tpu.matmul %150, %130, %cst_92 {dimension_numbers = #tpu.dot_dimension_numbers<[1], [0], [0], [1], [0, 0, 1, 1], [], []>} : vector<32x128xf32>, vector<128x64xf32>, vector<32x64xf32> -> vector<32x64xf32>
    %c0_93 = arith.constant 0 : index
    %c3_94 = arith.constant 3 : index
    %c0_95 = arith.constant 0 : index
    %c0_96 = arith.constant 0 : index
    %152 = vector.load %arg17[%c0_93, %c3_94, %c0_95, %c0_96] : memref<1x4x32x64xf32, #tpu.memory_space<vmem>>, vector<1x1x32x64xf32>
    %153 = vector.shape_cast %152 : vector<1x1x32x64xf32> to vector<32x64xf32>
    %154 = vector.shape_cast %151 : vector<32x64xf32> to vector<1x1x32x64xf32>
    tpu.vector_store %arg17[%c0_93, %c3_94, %c0_95, %c0_96], %154 {strides = array<i32>} : memref<1x4x32x64xf32, #tpu.memory_space<vmem>>, vector<1x1x32x64xf32>,
    return
  }
  func.func @transform_0(%arg0: i32) -> (i32, i32, i32) {
    %c0_i32 = arith.constant 0 : i32
    %c0_i32_0 = arith.constant 0 : i32
    %c0_i32_1 = arith.constant 0 : i32
    return %arg0, %c0_i32, %c0_i32_0 : i32, i32, i32
  }
  func.func @transform_1(%arg0: i32) -> (i32, i32, i32) {
    %c0_i32 = arith.constant 0 : i32
    %c0_i32_0 = arith.constant 0 : i32
    %c0_i32_1 = arith.constant 0 : i32
    return %arg0, %c0_i32, %c0_i32_0 : i32, i32, i32
  }
  func.func @transform_2(%arg0: i32) -> (i32, i32, i32, i32) {
    %c0_i32 = arith.constant 0 : i32
    %c0_i32_0 = arith.constant 0 : i32
    %c0_i32_1 = arith.constant 0 : i32
    %c0_i32_2 = arith.constant 0 : i32
    return %arg0, %c0_i32, %c0_i32_0, %c0_i32_1 : i32, i32, i32, i32
  }
  func.func @transform_3(%arg0: i32) -> (i32, i32) {
    %c0_i32 = arith.constant 0 : i32
    %c0_i32_0 = arith.constant 0 : i32
    %c0_i32_1 = arith.constant 0 : i32
    return %c0_i32, %c0_i32_0 : i32, i32
  }
  func.func @transform_4(%arg0: i32) -> (i32, i32) {
    %c0_i32 = arith.constant 0 : i32
    %c0_i32_0 = arith.constant 0 : i32
    %c0_i32_1 = arith.constant 0 : i32
    return %c0_i32, %c0_i32_0 : i32, i32
  }
  func.func @transform_5(%arg0: i32) -> (i32, i32) {
    %c0_i32 = arith.constant 0 : i32
    %c0_i32_0 = arith.constant 0 : i32
    %c0_i32_1 = arith.constant 0 : i32
    return %c0_i32, %c0_i32_0 : i32, i32
  }
  func.func @transform_6(%arg0: i32) -> (i32, i32) {
    %c0_i32 = arith.constant 0 : i32
    %c0_i32_0 = arith.constant 0 : i32
    %c0_i32_1 = arith.constant 0 : i32
    return %c0_i32, %c0_i32_0 : i32, i32
  }
  func.func @transform_7(%arg0: i32) -> (i32, i32) {
    %c0_i32 = arith.constant 0 : i32
    %c0_i32_0 = arith.constant 0 : i32
    %c0_i32_1 = arith.constant 0 : i32
    return %c0_i32, %c0_i32_0 : i32, i32
  }
  func.func @transform_8(%arg0: i32) -> (i32, i32) {
    %c0_i32 = arith.constant 0 : i32
    %c0_i32_0 = arith.constant 0 : i32
    %c0_i32_1 = arith.constant 0 : i32
    return %c0_i32, %c0_i32_0 : i32, i32
  }
  func.func @transform_9(%arg0: i32) -> (i32, i32) {
    %c0_i32 = arith.constant 0 : i32
    %c0_i32_0 = arith.constant 0 : i32
    %c0_i32_1 = arith.constant 0 : i32
    return %c0_i32, %c0_i32_0 : i32, i32
  }
  func.func @transform_10(%arg0: i32) -> (i32, i32) {
    %c0_i32 = arith.constant 0 : i32
    %c0_i32_0 = arith.constant 0 : i32
    %c0_i32_1 = arith.constant 0 : i32
    return %c0_i32, %c0_i32_0 : i32, i32
  }
  func.func @transform_11(%arg0: i32) -> (i32, i32) {
    %c0_i32 = arith.constant 0 : i32
    %c0_i32_0 = arith.constant 0 : i32
    %c0_i32_1 = arith.constant 0 : i32
    return %c0_i32, %c0_i32_0 : i32, i32
  }
  func.func @transform_12(%arg0: i32) -> (i32, i32) {
    %c0_i32 = arith.constant 0 : i32
    %c0_i32_0 = arith.constant 0 : i32
    %c0_i32_1 = arith.constant 0 : i32
    return %c0_i32, %c0_i32_0 : i32, i32
  }
  func.func @transform_13(%arg0: i32) -> (i32, i32, i32) {
    %c0_i32 = arith.constant 0 : i32
    %c0_i32_0 = arith.constant 0 : i32
    %c0_i32_1 = arith.constant 0 : i32
    %c0_i32_2 = arith.constant 0 : i32
    return %c0_i32, %c0_i32_0, %c0_i32_1 : i32, i32, i32
  }
  func.func @transform_14(%arg0: i32) -> (i32, i32) {
    %c0_i32 = arith.constant 0 : i32
    %c0_i32_0 = arith.constant 0 : i32
    %c0_i32_1 = arith.constant 0 : i32
    return %c0_i32, %c0_i32_0 : i32, i32
  }
  func.func @transform_15(%arg0: i32) -> (i32, i32, i32) {
    %c0_i32 = arith.constant 0 : i32
    %c0_i32_0 = arith.constant 0 : i32
    %c0_i32_1 = arith.constant 0 : i32
    return %arg0, %c0_i32, %c0_i32_0 : i32, i32, i32
  }
  func.func @transform_16(%arg0: i32) -> (i32, i32, i32, i32) {
    %c0_i32 = arith.constant 0 : i32
    %c0_i32_0 = arith.constant 0 : i32
    %c0_i32_1 = arith.constant 0 : i32
    %c0_i32_2 = arith.constant 0 : i32
    return %arg0, %c0_i32, %c0_i32_0, %c0_i32_1 : i32, i32, i32, i32
  }
}

</mosaic_0001>

<bundles_post_ra>
// kernel: cmt_forward.1
= control target key start
LH: loop header
LB: loop body
LE: loop exit
PB: predicated region body
PF: predicated region fallthrough
CT: control target
= control target key end

     0   :  { %s1991_s23 = smov 0   ;;  %s2567_s0 = inlined_call_operand.vmem [shape: f32[2,32,256], index: 0, kind: input, shape index: {}]   ;;  %s2568_s1 = inlined_call_operand.vmem [shape: f32[2,32,256], index: 1, kind: input, shape index: {}]   ;;  %s2569_s2 = inlined_call_operand.vmem [shape: f32[2,4,32,64], index: 2, kind: input, shape index: {}]   ;;  %s2570_s3 = inlined_call_operand.vmem [shape: f32[256,4], index: 3, kind: input, shape index: {}]   ;;  %s2571_s4 = inlined_call_operand.vmem [shape: f32[1,32], index: 4, kind: input, shape index: {}]   ;;  %s2572_s5 = inlined_call_operand.<no memory space> [shape: f32[1,1], index: 5, kind: input, shape index: {}]   ;;  %s2573_s6 = inlined_call_operand.vmem [shape: f32[32,32], index: 6, kind: input, shape index: {}]   ;;  %s2574_s7 = inlined_call_operand.vmem [shape: f32[32,1], index: 7, kind: input, shape index: {}]   ;;  %s2575_s8 = inlined_call_operand.vmem [shape: f32[32,32], index: 8, kind: input, shape index: {}]   ;;  %s2576_s9 = inlined_call_operand.vmem [shape: f32[32,1], index: 9, kind: input, shape index: {}]   ;;  %s2577_s10 = inlined_call_operand.vmem [shape: f32[32,32], index: 10, kind: input, shape index: {}]   ;;  %s2578_s11 = inlined_call_operand.vmem [shape: f32[32,1], index: 11, kind: input, shape index: {}]   ;;  %s2579_s12 = inlined_call_operand.vmem [shape: f32[32,32], index: 12, kind: input, shape index: {}]   ;;  %s2580_s13 = inlined_call_operand.vmem [shape: f32[4,32,128], index: 13, kind: input, shape index: {}]   ;;  %s2581_s14 = inlined_call_operand.vmem [shape: f32[32,1], index: 14, kind: input, shape index: {}]   ;;  %s2582_s15 = inlined_call_operand.vmem [shape: f32[2,32,256], index: 15, kind: output, shape index: {0}]   ;;  %s2583_s16 = inlined_call_operand.vmem [shape: f32[2,4,32,64], index: 16, kind: output, shape index: {1}]  }
   0x1   :  { %2584 = sst [smem:[#allocation3_spill]] %s2567_s0  ;;  %v22_v0 = vstv %s2572_s5 }
   0x2   :  { %23 = vst [vmem:[#allocation2] sm:$0x1] %v22_v0 }
   0x3 LB: > { %s1733_s24 = sadd.s32 4294967295, %s1897_s23   ;;  %p1737_p0 = scmp.ge.s32.totalorder %s1897_s23, 1  ;;  %s1897_s23 = sphi %s1991_s23, %s29_s23  }
   0x4   : > { %p487_p1 = scmp.lt.s32.totalorder %s1897_s23, 3 }
   0x6   : > { %p488_p2 = pnand %p1737_p0, %p487_p1 }
   0x7   : > { %p552_p3 = scmp.lt.s32.totalorder (!%p488_p2), %s1733_s24, 1  ;;  %s2585_s17 = sld [smem:[#allocation3_spill]] (!%p488_p2) }
   0x8   : > { %491 = sbr.rel (%p488_p2) target bundleno = 1308 (0x51c), region = 80 }
   0xd   : > { %v1899_v1 = vmov 0   ;;  %v594_v2 = vld [vmem:[#allocation2] sm:$0x1]  ;;  %s2589_s24 = smov (!%p552_p3, %s1733_s24), 1  ;;  %vm601_vm0 = vcmask 261120   ;;  %vm667_vm1 = vcmask 1040384  }
   0xe   : > { %1835 = vset.pattern.permute.xlu0 %v1899_v1  ;;  %1836 = vset.pattern.permute.xlu2 %v1899_v1  ;;  %s2005_s5 = sshll.u32 %s2589_s24, 6  ;;  %v593_v11 = vld [vmem:[%s2571_s4] sm:$0x1]  ;;  %v1043_v43 = vld [vmem:[%s2576_s9 + $0x8] sm:$0xff]  ;;  %v1155_v44 = vld [vmem:[%s2578_s11 + $0x18] sm:$0xff] }
   0xf   : > { %597 = vperm.xlu0 %1835, %v594_v2   ;;  %1837 = vset.pattern.permute.xlu1 %v1899_v1  ;;  %s561_s27 = scalar_lea.vmem %s2568_s1, %s2005_s5  ;;  %s556_s18 = scalar_lea.vmem %s2585_s17, %s2005_s5  ;;  %v680_v50 = vld [vmem:[%s2573_s6] sm:$0xff]  ;;  %v681_v55 = vld [vmem:[%s2573_s6 + $0x8] sm:$0xff]  ;;  %v682_v58 = vld [vmem:[%s2573_s6 + $0x10] sm:$0xff] }
  0x10   : > { %v2011_v3 = vld [vmem:[%s561_s27 + $0x30] sm:$0xff]  ;;  %v2013_v4 = vld [vmem:[%s561_s27 + $0x38] sm:$0xff]  ;;  %v2015_v5 = vld [vmem:[%s561_s27 + $0x20] sm:$0xff]  ;;  %s2415_s26 = scalar_lea.vmem %s2582_s15, %s2005_s5 }
  0x11   : > { %617 = vmatpush.msra.mxu0 %v2011_v3  ;;  %637 = vmatpush.msra.mxu1 %v2013_v4  ;;  %v2019_v6 = vld [vmem:[%s561_s27 + $0x28] sm:$0xff]  ;;  %v2021_v7 = vld [vmem:[%s561_s27 + $0x10] sm:$0xff]  ;;  %v2023_v8 = vld [vmem:[%s561_s27 + $0x18] sm:$0xff] }
  0x12   : > { %v2027_v9 = vld [vmem:[%s561_s27] sm:$0xff]  ;;  %v2029_v10 = vld [vmem:[%s561_s27 + $0x8] sm:$0xff]  ;;  %v2044_v18 = vld [vmem:[%s556_s18 + $0x30] sm:$0xff] }
  0x13   : > { %618 = vmatpush.msra.mxu0 %v2015_v5  ;;  %638 = vmatpush.msra.mxu1 %v2019_v6  ;;  %v2046_v19 = vld [vmem:[%s556_s18 + $0x38] sm:$0xff]  ;;  %v2048_v20 = vld [vmem:[%s556_s18 + $0x20] sm:$0xff]  ;;  %v2050_v21 = vld [vmem:[%s556_s18 + $0x28] sm:$0xff] }
  0x14   : > { %v2052_v24 = vld [vmem:[%s556_s18] sm:$0xff]  ;;  %v2054_v25 = vld [vmem:[%s556_s18 + $0x8] sm:$0xff]  ;;  %v2062_v35 = vld [vmem:[%s556_s18 + $0x10] sm:$0xff] }
  0x15   : > { %619 = vmatpush.msra.mxu0 %v2021_v7  ;;  %639 = vmatpush.msra.mxu1 %v2023_v8  ;;  %v2064_v36 = vld [vmem:[%s556_s18 + $0x18] sm:$0xff]  ;;  %v978_v61 = vld [vmem:[%s2570_s3 + $0xf0] sm:$0xff]  ;;  %v977_v62 = vld [vmem:[%s2570_s3 + $0xe8] sm:$0xff]  ;;  %s1818_s18 = sshll.u32 %s2589_s24, 7 }
  0x16   : > { %v683_v59 = vld [vmem:[%s2573_s6 + $0x18] sm:$0xff]  ;;  %v976_v0 = vld [vmem:[%s2570_s3 + $0xe0] sm:$0xff]  ;;  %v962_v2 = vld [vmem:[%s2570_s3 + $0x70] sm:$0xff]  ;;  %s2340_s21 = scalar_lea.vmem %s2569_s2, %s1818_s18  ;;  %s2530_s20 = scalar_lea.vmem %s2583_s16, %s1818_s18 }
  0x17   : > { %620 = vmatpush.msra.mxu0 %v2027_v9  ;;  %640 = vmatpush.msra.mxu1 %v2029_v10  ;;  %v979_v60 = vld [vmem:[%s2570_s3 + $0xf8] sm:$0xff] }
  0x18   : > { %1748 = vmatmul.msk.f32.vlgmr.msra.gmra.mxu0 %vm601_vm0, %v593_v11  ;;  %1749 = vmatmul.msk.f32.vlgmr.msra.gmra.mxu1 %vm601_vm0, %v593_v11  ;;  %v963_v63 = vld [vmem:[%s2570_s3 + $0x78] sm:$0xff] }
  0x19   : > { %980 = vmatpush.msrb.mxu1 %v963_v63  ;;  %v975_v11 = vld [vmem:[%s2570_s3 + $0xd8] sm:$0xff] }
  0x1b   : > { %981 = vmatpush.msrb.mxu1 %v962_v2 }
  0x81   : > { %v598_v12 = vpop.permute.xlu0 %597 }
  0x82   : > { %v600_v13 = vperm.slane %v598_v12, 0  ;;  %v961_v12 = vld [vmem:[%s2570_s3 + $0x68] sm:$0xff] }
  0x83   : > { %982 = vmatpush.msrb.mxu1 %v961_v12 }
  0x95   : > { %v622_v14 = vpop.f32.mrf.mxu0  ;;  %v642_v15 = vpop.f32.mrf.mxu1 }
  0x96   : > { %v623_v16 = vadd.f32 %v622_v14, %v600_v13  ;;  %v643_v17 = vadd.f32 %v642_v15, %v600_v13  ;;  %v974_v13 = vld [vmem:[%s2570_s3 + $0xd0] sm:$0xff]  ;;  %v960_v14 = vld [vmem:[%s2570_s3 + $0x60] sm:$0xff]  ;;  %v973_v15 = vld [vmem:[%s2570_s3 + $0xc8] sm:$0xff] }
  0x97   : > { %983 = vmatpush.msrb.mxu1 %v960_v14 }
  0x98   : > { %v645_v22 = vperm.slane %v623_v16, 0  ;;  %v646_v23 = vperm.slane %v643_v17, 0  ;;  %v668_v39 = vsel %vm667_vm1, %v623_v16, 0.0  ;;  %v669_v40 = vsel %vm667_vm1, %v643_v17, 0.0  ;;  %v959_v16 = vld [vmem:[%s2570_s3 + $0x58] sm:$0xff]  ;;  %v972_v17 = vld [vmem:[%s2570_s3 + $0xc0] sm:$0xff] }
  0x99   : > { %v670_v42 = vadd.f32 %v669_v40, %v668_v39  ;;  %984 = vmatpush.msrb.mxu1 %v959_v16  ;;  %v965_v39 = vld [vmem:[%s2570_s3 + $0x88] sm:$0xff]  ;;  %v951_v40 = vld [vmem:[%s2570_s3 + $0x18] sm:$0xff] }
  0x9a   : > { %v653_v26 = vmul.f32 %v645_v22, %v2044_v18  ;;  %v654_v27 = vmul.f32 %v646_v23, %v2046_v19  ;;  %v651_v28 = vmul.f32 %v645_v22, %v2048_v20  ;;  %v652_v29 = vmul.f32 %v646_v23, %v2050_v21 }
  0x9b   : > { %v647_v30 = vmul.f32 %v645_v22, %v2052_v24  ;;  %v648_v31 = vmul.f32 %v646_v23, %v2054_v25  ;;  %v649_v37 = vmul.f32 %v645_v22, %v2062_v35  ;;  %v650_v38 = vmul.f32 %v646_v23, %v2064_v36  ;;  %v958_v22 = vld [vmem:[%s2570_s3 + $0x50] sm:$0xff]  ;;  %v971_v23 = vld [vmem:[%s2570_s3 + $0xb8] sm:$0xff] }
  0x9c   : > { %v664_v32 = vadd.f32 %v654_v27, %v653_v26  ;;  %v661_v33 = vadd.f32 %v652_v29, %v651_v28  ;;  %985 = vmatpush.msrb.mxu1 %v958_v22  ;;  %v957_v26 = vld [vmem:[%s2570_s3 + $0x48] sm:$0xff]  ;;  %v970_v27 = vld [vmem:[%s2570_s3 + $0xb0] sm:$0xff]  ;;  %v956_v28 = vld [vmem:[%s2570_s3 + $0x40] sm:$0xff] }
  0x9d   : > { %v655_v34 = vadd.f32 %v648_v31, %v647_v30  ;;  %v658_v41 = vadd.f32 %v650_v38, %v649_v37  ;;  %v969_v29 = vld [vmem:[%s2570_s3 + $0xa8] sm:$0xff]  ;;  %v955_v30 = vld [vmem:[%s2570_s3 + $0x38] sm:$0xff]  ;;  %v968_v31 = vld [vmem:[%s2570_s3 + $0xa0] sm:$0xff] }
  0x9e   : > { %665 = vadd.xlane.f32.xlu0 %v664_v32  ;;  %662 = vadd.xlane.f32.xlu1 %v661_v33  ;;  %v954_v32 = vld [vmem:[%s2570_s3 + $0x30] sm:$0xff]  ;;  %v967_v33 = vld [vmem:[%s2570_s3 + $0x98] sm:$0xff]  ;;  %v952_v38 = vld [vmem:[%s2570_s3 + $0x20] sm:$0xff] }
  0x9f   : > { %656 = vadd.xlane.f32.xlu2 %v655_v34  ;;  %986 = vmatpush.msrb.mxu1 %v957_v26  ;;  %v953_v34 = vld [vmem:[%s2570_s3 + $0x28] sm:$0xff]  ;;  %v966_v37 = vld [vmem:[%s2570_s3 + $0x90] sm:$0xff] }
  0xa1   : > { %987 = vmatpush.msrb.mxu1 %v956_v28 }
  0xa3   : > { %988 = vmatpush.msrb.mxu1 %v955_v30 }
  0xa5   : > { %989 = vmatpush.msrb.mxu1 %v954_v32 }
  0xa6   : > { %659 = vadd.xlane.f32.xlu1 %v658_v41  ;;  %v964_v41 = vld [vmem:[%s2570_s3 + $0x80] sm:$0xff] }
  0xa7   : > { %671 = vadd.xlane.f32.xlu2 %v670_v42  ;;  %990 = vmatpush.msrb.mxu1 %v953_v34  ;;  %v950_v42 = vld [vmem:[%s2570_s3 + $0x10] sm:$0xff] }
  0xa9   : > { %991 = vmatpush.msrb.mxu1 %v952_v38 }
  0xab   : > { %992 = vmatpush.msrb.mxu1 %v951_v40 }
  0xad   : > { %993 = vmatpush.msrb.mxu1 %v950_v42 }
  0xb2   : > { %1053 = vperm.xlu0 %1835, %v1043_v43   ;;  %v949_v43 = vld [vmem:[%s2570_s3 + $0x8] sm:$0xff] }
  0xb3   : > { %994 = vmatpush.msrb.mxu1 %v949_v43 }
  0xba   : > { %1173 = vperm.xlu0 %1835, %v1155_v44   ;;  %v948_v44 = vld [vmem:[%s2570_s3] sm:$0xff] }
  0xbb   : > { %995 = vmatpush.msrb.mxu1 %v948_v44 }
  0xbc   : > { %996 = vmatmul.f32.vlgmr.msrb.gmra.mxu1 %v2027_v9 }
  0xc4   : > { %999 = vmatmul.f32.gmra.mxu1 %v2021_v7 }
  0xcc   : > { %1002 = vmatmul.f32.gmra.mxu1 %v2015_v5 }
  0xd4   : > { %1005 = vmatmul.f32.gmra.mxu1 %v2011_v3 }
 0x111   : > { %v666_v45 = vpop.xlane.xlu0 %665  ;;  %v663_v46 = vpop.xlane.xlu1 %662 }
 0x112   : > { %v657_v47 = vpop.xlane.xlu2 %656  ;;  %717 = vmatpush.msra.mxu2 %v666_v45 }
 0x114   : > { %718 = vmatpush.msra.mxu2 %v663_v46  ;;  %v685_v46 = vld [vmem:[%s2574_s7 + $0x8] sm:$0xff] }
 0x119   : > { %v660_v48 = vpop.xlane.xlu1 %659 }
 0x11a   : > { %v672_v49 = vpop.xlane.xlu2 %671  ;;  %719 = vmatpush.msra.mxu2 %v660_v48 }
 0x11b   : > { %v673_v51 = vrot.slane %v672_v49, 4 }
 0x11c   : > { %720 = vmatpush.msra.mxu2 %v657_v47  ;;  %v684_v47 = vld [vmem:[%s2574_s7] sm:$0xff] }
 0x11d   : > { %v674_v52 = vadd.f32 %v673_v51, %v672_v49  ;;  %1750 = vmatmul.msk.f32.vlgmr.msra.gmra.mxu2 %vm601_vm0, %v680_v50 }
 0x11e   : > { %1009 = vmatpush.msrb.mxu2 %v979_v60 }
 0x11f   : > { %v675_v53 = vrot.slane %v674_v52, 2 }
 0x120   : > { %1010 = vmatpush.msrb.mxu2 %v978_v61 }
 0x121   : > { %v676_v54 = vadd.f32 %v675_v53, %v674_v52 }
 0x122   : > { %1011 = vmatpush.msrb.mxu2 %v977_v62 }
 0x123   : > { %v677_v56 = vrot.slane %v676_v54, 1 }
 0x124   : > { %1012 = vmatpush.msrb.mxu2 %v976_v0 }
 0x125   : > { %1751 = vmatmul.msk.f32.gmra.mxu2 %vm601_vm0, %v681_v55  ;;  %v678_v57 = vadd.f32 %v677_v56, %v676_v54 }
 0x126   : > { %1013 = vmatpush.msrb.mxu2 %v975_v11 }
 0x127   : > { %1821 = vpush %v678_v57 }
 0x128   : > { %1014 = vmatpush.msrb.mxu2 %v974_v13 }
 0x12a   : > { %1015 = vmatpush.msrb.mxu2 %v973_v15 }
 0x12c   : > { %1016 = vmatpush.msrb.mxu2 %v972_v17 }
 0x12d   : > { %1752 = vmatmul.msk.f32.gmra.mxu2 %vm601_vm0, %v682_v58 }
 0x12e   : > { %1017 = vmatpush.msrb.mxu2 %v971_v23 }
 0x130   : > { %1018 = vmatpush.msrb.mxu2 %v970_v27 }
 0x132   : > { %1019 = vmatpush.msrb.mxu2 %v969_v29 }
 0x134   : > { %1020 = vmatpush.msrb.mxu2 %v968_v31 }
 0x135   : > { %1753 = vmatmul.msk.f32.gmra.mxu2 %vm601_vm0, %v683_v59 }
 0x136   : > { %1021 = vmatpush.msrb.mxu2 %v967_v33 }
 0x138   : > { %1022 = vmatpush.msrb.mxu2 %v966_v37 }
 0x13a   : > { %1023 = vmatpush.msrb.mxu2 %v965_v39 }
 0x13c   : > { %1024 = vmatpush.msrb.mxu2 %v964_v41 }
 0x13d   : > { %1025 = vmatmul.f32.vlgmr.msrb.gmra.mxu2 %v2029_v10 }
 0x145   : > { %1028 = vmatmul.f32.gmra.mxu2 %v2023_v8  ;;  %v686_v8 = vld [vmem:[%s2574_s7 + $0x10] sm:$0xff] }
 0x14d   : > { %1031 = vmatmul.f32.gmra.mxu2 %v2019_v6  ;;  %v687_v6 = vld [vmem:[%s2574_s7 + $0x18] sm:$0xff] }
 0x155   : > { %1034 = vmatmul.f32.gmra.mxu2 %v2013_v4 }
 0x158   : > { %s1822_s17 = spop %1821 }
 0x159   : > { %v688_v10 = vstv %s1822_s17 }
 0x15a   : > { %v690_v48 = vmul.f32 %v688_v10, %v685_v46  ;;  %v689_v49 = vmul.f32 %v688_v10, %v684_v47  ;;  %v691_v54 = vmul.f32 %v688_v10, %v686_v8  ;;  %v692_v59 = vmul.f32 %v688_v10, %v687_v6 }
 0x1a0   : > { %v722_v45 = vpop.f32.mrf.mxu2 }
 0x1a1   : > { %v723_v52 = vadd.f32 %v722_v45, %v689_v49 }
 0x1a3   : > { %v1754_v53 = vmul.f32 -1.442695, %v723_v52 }
 0x1a8   : > { %v725_v50 = vpop.f32.mrf.mxu2 }
 0x1a9   : > { %v726_v51 = vadd.f32 %v725_v50, %v690_v48 }
 0x1ab   : > { %v1755_v9 = vmul.f32 -1.442695, %v726_v51 }
 0x1ad   : > { %1859 = vpow2.f32 %v1755_v9 }
 0x1ae   : > { %1861 = vpow2.f32 %v1754_v53 }
 0x1b0   : > { %v728_v55 = vpop.f32.mrf.mxu2 }
 0x1b1   : > { %v729_v56 = vadd.f32 %v728_v55, %v691_v54 }
 0x1b3   : > { %v1860_v7 = vpop.eup %1859  ;;  %v1756_v57 = vmul.f32 -1.442695, %v729_v56 }
 0x1b4   : > { %v747_v58 = vadd.f32 1.0, %v1860_v7  ;;  %v1862_v60 = vpop.eup %1861 }
 0x1b5   : > { %1863 = vpow2.f32 %v1756_v57  ;;  %v2206_v63 = vadd.f32 1.0, %v1862_v60  ;;  %v1044_v60 = vld [vmem:[%s2576_s9 + $0x10] sm:$0xff] }
 0x1b6   : > { %1865 = vrcp.f32 %v747_v58  ;;  %v776_v39 = vand.u32 2147483648, %v747_v58  ;;  %vm770_vm7 = vweird.f32 %v747_v58  ;;  %v774_v42 = vand.u32 2147483647, %v747_v58 }
 0x1b7   : > { %v761_v8 = vand.u32 2147483648, %v2206_v63  ;;  %vm755_vm15 = vweird.f32 %v2206_v63  ;;  %v759_v55 = vand.u32 2147483647, %v2206_v63 }
 0x1b8   : > { %v731_v61 = vpop.f32.mrf.mxu2  ;;  %v777_v47 = vor.u32 1.1754944e-38, %v776_v39  ;;  %vm775_vm11 = vcmp.eq.f32.partialorder %v774_v42, 8.507059e+37 }
 0x1b9   : > { %v732_v62 = vadd.f32 %v731_v61, %v692_v59  ;;  %v762_v7 = vor.u32 1.1754944e-38, %v761_v8  ;;  %v1042_v59 = vld [vmem:[%s2576_s9] sm:$0xff]  ;;  %v1153_v61 = vld [vmem:[%s2578_s11 + $0x8] sm:$0xff] }
 0x1bb   : > { %v1864_v5 = vpop.eup %1863  ;;  %v1757_v0 = vmul.f32 -1.442695, %v732_v62  ;;  %v1152_v62 = vld [vmem:[%s2578_s11] sm:$0xff] }
 0x1bc   : > { %v748_v4 = vadd.f32 1.0, %v1864_v5  ;;  %v1866_v2 = vpop.eup %1865  ;;  %v1154_v5 = vld [vmem:[%s2578_s11 + $0x10] sm:$0xff] }
 0x1bd   : > { %1867 = vpow2.f32 %v1757_v0  ;;  %v766_v11 = vmul.f32 %v1866_v2, %v747_v58  ;;  %vm771_vm5 = vweird.f32 %v1866_v2  ;;  %v1045_v58 = vld [vmem:[%s2576_s9 + $0x18] sm:$0xff] }
 0x1be   : > { %1869 = vrcp.f32 %v748_v4  ;;  %v791_v22 = vand.u32 2147483648, %v748_v4  ;;  %v789_v27 = vand.u32 2147483647, %v748_v4  ;;  %vm785_vm3 = vweird.f32 %v748_v4  ;;  %vm772_vm8 = vmor %vm770_vm7, %vm771_vm5 }
 0x1bf   : > { %1871 = vrcp.f32 %v2206_v63  ;;  %v767_v17 = vsub.f32 1.0, %v766_v11 }
 0x1c0   : > { %v792_v31 = vor.u32 1.1754944e-38, %v791_v22  ;;  %vm790_vm6 = vcmp.eq.f32.partialorder %v789_v27, 8.507059e+37  ;;  %v1026_v0 = vpop.f32.mrf.mxu2 }
 0x1c1   : > { %v768_v28 = vmul.f32 %v1866_v2, %v767_v17 }
 0x1c3   : > { %v1868_v12 = vpop.eup %1867  ;;  %v769_v37 = vadd.f32 %v1866_v2, %v768_v28 }
 0x1c4   : > { %v1870_v13 = vpop.eup %1869  ;;  %v749_v14 = vadd.f32 1.0, %v1868_v12 }
 0x1c5   : > { %v1872_v15 = vpop.eup %1871  ;;  %v781_v16 = vmul.f32 %v1870_v13, %v748_v4  ;;  %vm786_vm2 = vweird.f32 %v1870_v13  ;;  %v773_v46 = vsel %vm772_vm8, %v1866_v2, %v769_v37  ;;  %v1041_v37 = vld [vmem:[%s2575_s8 + $0x18] sm:$0xff] }
 0x1c6   : > { %1873 = vrcp.f32 %v749_v14  ;;  %v751_v23 = vmul.f32 %v1872_v15, %v2206_v63  ;;  %vm787_vm4 = vmor %vm785_vm3, %vm786_vm2  ;;  %v806_v43 = vand.u32 2147483648, %v749_v14  ;;  %v804_v10 = vand.u32 2147483647, %v749_v14  ;;  %v997_v63 = vpop.f32.mrf.mxu1 }
 0x1c7   : > { %v782_v3 = vsub.f32 1.0, %v781_v16  ;;  %vm800_vm10 = vweird.f32 %v749_v14  ;;  %v778_v50 = vsel %vm775_vm11, %v777_v47, %v773_v46  ;;  %vm756_vm14 = vweird.f32 %v1872_v15  ;;  %v1054_v46 = vpop.permute.xlu0 %1053 }
 0x1c8   : > { %v752_v32 = vsub.f32 1.0, %v751_v23  ;;  %v807_v49 = vor.u32 1.1754944e-38, %v806_v43  ;;  %vm805_vm13 = vcmp.eq.f32.partialorder %v804_v10, 8.507059e+37  ;;  %v811_v54 = vsub.f32 1.0, %v778_v50  ;;  %vm757_vm1 = vmor %vm755_vm15, %vm756_vm14  ;;  %v1029_v2 = vpop.f32.mrf.mxu2 }
 0x1c9   : > { %v783_v26 = vmul.f32 %v1870_v13, %v782_v3  ;;  %vm760_vm2 = vcmp.eq.f32.partialorder %v759_v55, 8.507059e+37  ;;  %vm1180_vm3 = vcmask 31744  }
 0x1ca   : > { %v753_v44 = vmul.f32 %v1872_v15, %v752_v32  ;;  %v1038_v32 = vld [vmem:[%s2575_s8] sm:$0xff] }
 0x1cb   : > { %v784_v29 = vadd.f32 %v1870_v13, %v783_v26 }
 0x1cc   : > { %v1874_v30 = vpop.eup %1873  ;;  %v754_v52 = vadd.f32 %v1872_v15, %v753_v44 }
 0x1cd   : > { %v788_v33 = vsel %vm787_vm4, %v1870_v13, %v784_v29  ;;  %v796_v34 = vmul.f32 %v1874_v30, %v749_v14  ;;  %vm801_vm9 = vweird.f32 %v1874_v30 }
 0x1ce   : > { %v793_v38 = vsel %vm790_vm6, %v792_v31, %v788_v33  ;;  %vm802_vm12 = vmor %vm800_vm10, %vm801_vm9  ;;  %v758_v56 = vsel %vm757_vm1, %v1872_v15, %v754_v52  ;;  %v1000_v4 = vpop.f32.mrf.mxu1  ;;  %v817_v31 = vld [vmem:[%s2579_s12 + $0x18] sm:$0xff]  ;;  %v1039_v33 = vld [vmem:[%s2575_s8 + $0x8] sm:$0xff] }
 0x1cf   : > { %v812_v40 = vsub.f32 1.0, %v793_v38  ;;  %v797_v41 = vsub.f32 1.0, %v796_v34  ;;  %v763_v57 = vsel %vm760_vm2, %v762_v7, %v758_v56  ;;  %v1040_v34 = vld [vmem:[%s2575_s8 + $0x10] sm:$0xff] }
 0x1d0   : > { %v810_v6 = vsub.f32 1.0, %v763_v57  ;;  %v1032_v13 = vpop.f32.mrf.mxu2 }
 0x1d1   : > { %830 = vperm.xlu2 %1836, %v812_v40   ;;  %v798_v45 = vmul.f32 %v1874_v30, %v797_v41 }
 0x1d3   : > { %v799_v48 = vadd.f32 %v1874_v30, %v798_v45 }
 0x1d5   : > { %v803_v51 = vsel %vm802_vm12, %v1874_v30, %v799_v48 }
 0x1d6   : > { %v808_v9 = vsel %vm805_vm13, %v807_v49, %v803_v51  ;;  %v1003_v12 = vpop.f32.mrf.mxu1 }
 0x1d7   : > { %v813_v53 = vsub.f32 1.0, %v808_v9 }
 0x1d8   : > { %v1035_v28 = vpop.f32.mrf.mxu2 }
 0x1d9   : > { %835 = vperm.xlu1 %1837, %v813_v53   ;;  %825 = vperm.xlu2 %1836, %v811_v54  }
 0x1de   : > { %v1006_v27 = vpop.f32.mrf.mxu1 }
 0x1df   : > { %v1036_v29 = vadd.f32 %v1035_v28, %v1006_v27 }
 0x1e1   : > { %1063 = vperm.xlu2 %1836, %v1045_v58   ;;  %820 = vperm.xlu1 %1837, %v810_v6  }
 0x1e9   : > { %1048 = vperm.xlu2 %1836, %v1042_v59   ;;  %1058 = vperm.xlu1 %1837, %v1044_v60   ;;  %v1174_v60 = vpop.permute.xlu0 %1173 }
 0x1f1   : > { %1163 = vperm.xlu2 %1836, %v1153_v61   ;;  %1158 = vperm.xlu1 %1837, %v1152_v62   ;;  %v1900_v62 = vmov 3  }
 0x1f2   : > { %1844 = vset.pattern.permute.xlu0 %v1900_v62 }
 0x1f9   : > { %1168 = vperm.xlu1 %1837, %v1154_v5   ;;  %1838 = vset.pattern.permute.xlu2 %v1900_v62  ;;  %v1901_v5 = vmov 2  }
 0x201   : > { %1839 = vset.pattern.permute.xlu1 %v1901_v5 }
 0x22b   : > { %v831_v11 = vpop.permute.xlu2 %830 }
 0x22c   : > { %v842_v3 = vmul.f32 %v831_v11, %v2048_v20  ;;  %v843_v22 = vmul.f32 %v831_v11, %v2050_v21  ;;  %v814_v20 = vld [vmem:[%s2579_s12] sm:$0xff]  ;;  %v1033_v21 = vadd.f32 %v1032_v13, %v1003_v12  ;;  %v1109_v11 = vld [vmem:[%s2577_s10 + $0x10] sm:$0xff]  ;;  %v1110_v12 = vld [vmem:[%s2577_s10 + $0x18] sm:$0xff] }
 0x233   : > { %v826_v17 = vpop.permute.xlu2 %825 }
 0x234   : > { %v840_v23 = vmul.f32 %v826_v17, %v2062_v35  ;;  %v841_v26 = vmul.f32 %v826_v17, %v2064_v36  ;;  %v1030_v35 = vadd.f32 %v1029_v2, %v1000_v4  ;;  %v1027_v36 = vadd.f32 %v1026_v0, %v997_v63  ;;  %v1107_v4 = vld [vmem:[%s2577_s10] sm:$0xff]  ;;  %v1108_v2 = vld [vmem:[%s2577_s10 + $0x8] sm:$0xff] }
 0x23b   : > { %v1064_v41 = vpop.permute.xlu2 %1063 }
 0x243   : > { %v1049_v44 = vpop.permute.xlu2 %1048 }
 0x24b   : > { %v836_v14 = vpop.permute.xlu1 %835  ;;  %v1164_v51 = vpop.permute.xlu2 %1163 }
 0x24c   : > { %v844_v15 = vmul.f32 %v836_v14, %v2044_v18  ;;  %v845_v16 = vmul.f32 %v836_v14, %v2046_v19 }
 0x24e   : > { %894 = vmatpush.msra.mxu3 %v844_v15  ;;  %923 = vmatpush.msrb.mxu0 %v845_v16 }
 0x250   : > { %895 = vmatpush.msra.mxu3 %v842_v3  ;;  %924 = vmatpush.msrb.mxu0 %v843_v22  ;;  %v1902_v22 = vmov 1  }
 0x252   : > { %896 = vmatpush.msra.mxu3 %v840_v23  ;;  %925 = vmatpush.msrb.mxu0 %v841_v26 }
 0x253   : > { %v821_v18 = vpop.permute.xlu1 %820 }
 0x254   : > { %v838_v19 = vmul.f32 %v821_v18, %v2052_v24  ;;  %v839_v30 = vmul.f32 %v821_v18, %v2054_v25  ;;  %v815_v24 = vld [vmem:[%s2579_s12 + $0x8] sm:$0xff]  ;;  %v816_v25 = vld [vmem:[%s2579_s12 + $0x10] sm:$0xff] }
 0x256   : > { %897 = vmatpush.msra.mxu3 %v838_v19  ;;  %926 = vmatpush.msrb.mxu0 %v839_v30 }
 0x257   : > { %1758 = vmatmul.msk.f32.vlgmr.msra.gmra.mxu3 %vm601_vm0, %v814_v20  ;;  %1762 = vmatmul.msk.f32.vlgmr.msrb.gmra.mxu0 %vm601_vm0, %v814_v20  ;;  %v848_v20 = vld [vmem:[%s2581_s14 + $0x10] sm:$0xff] }
 0x258   : > { %1090 = vmatpush.msrb.mxu3 %v1036_v29 }
 0x25a   : > { %1091 = vmatpush.msrb.mxu3 %v1033_v21  ;;  %v847_v21 = vld [vmem:[%s2581_s14 + $0x8] sm:$0xff] }
 0x25b   : > { %v1059_v43 = vpop.permute.xlu1 %1058 }
 0x25c   : > { %1092 = vmatpush.msrb.mxu3 %v1030_v35  ;;  %v846_v35 = vld [vmem:[%s2581_s14] sm:$0xff] }
 0x25e   : > { %1093 = vmatpush.msrb.mxu3 %v1027_v36  ;;  %v849_v36 = vld [vmem:[%s2581_s14 + $0x18] sm:$0xff] }
 0x25f   : > { %1759 = vmatmul.msk.f32.gmra.mxu3 %vm601_vm0, %v815_v24  ;;  %1763 = vmatmul.msk.f32.gmra.mxu0 %vm601_vm0, %v815_v24 }
 0x263   : > { %v1159_v47 = vpop.permute.xlu1 %1158 }
 0x267   : > { %1760 = vmatmul.msk.f32.gmra.mxu3 %vm601_vm0, %v816_v25  ;;  %1764 = vmatmul.msk.f32.gmra.mxu0 %vm601_vm0, %v816_v25 }
 0x26b   : > { %v1169_v56 = vpop.permute.xlu1 %1168 }
 0x26f   : > { %1761 = vmatmul.msk.f32.gmra.mxu3 %vm601_vm0, %v817_v31  ;;  %1765 = vmatmul.msk.f32.gmra.mxu0 %vm601_vm0, %v817_v31 }
 0x277   : > { %1766 = vmatmul.msk.f32.vlgmr.msrb.gmra.mxu3 %vm601_vm0, %v1038_v32 }
 0x27f   : > { %1767 = vmatmul.msk.f32.gmra.mxu3 %vm601_vm0, %v1039_v33 }
 0x287   : > { %1768 = vmatmul.msk.f32.gmra.mxu3 %vm601_vm0, %v1040_v34 }
 0x28f   : > { %1769 = vmatmul.msk.f32.gmra.mxu3 %vm601_vm0, %v1041_v37  ;;  %v2346_v37 = vld [vmem:[%s2340_s21 + $0x60] sm:$0xff] }
 0x2d4   : > { %v2305_v13 = vpop.f32.mrf.mxu0 }
 0x2da   : > { %v2275_v38 = vpop.f32.mrf.mxu3 }
 0x2dc   : > { %v2307_v14 = vpop.f32.mrf.mxu0 }
 0x2e2   : > { %v2277_v39 = vpop.f32.mrf.mxu3 }
 0x2e4   : > { %v2309_v15 = vpop.f32.mrf.mxu0 }
 0x2ea   : > { %v2279_v40 = vpop.f32.mrf.mxu3 }
 0x2ec   : > { %v2311_v16 = vpop.f32.mrf.mxu0 }
 0x2f2   : > { %v2281_v42 = vpop.f32.mrf.mxu3 }
 0x2fa   : > { %v1095_v45 = vpop.f32.mrf.mxu3 }
 0x2fb   : > { %v1096_v10 = vadd.f32 %v1095_v45, %v1049_v44  ;;  %v2351_v45 = vld [vmem:[%s2340_s21 + $0x78] sm:$0xff] }
 0x2fd   : > { %v1176_v49 = vmul.f32 %v1159_v47, %v1096_v10 }
 0x2ff   : > { %v1181_v9 = vsel %vm1180_vm3, %v1176_v49, 0.0 }
 0x302   : > { %v1098_v48 = vpop.f32.mrf.mxu3 }
 0x303   : > { %v1099_v50 = vadd.f32 %v1098_v48, %v1054_v46 }
 0x305   : > { %v1177_v52 = vmul.f32 %v1164_v51, %v1099_v50 }
 0x307   : > { %v1182_v8 = vsel %vm1180_vm3, %v1177_v52, 0.0 }
 0x308   : > { %v1183_v53 = vadd.f32 %v1182_v8, %v1181_v9  ;;  %v2361_v9 = vld [vmem:[%s2340_s21 + $0x40] sm:$0xff] }
 0x30a   : > { %v1101_v54 = vpop.f32.mrf.mxu3 }
 0x30b   : > { %v1102_v55 = vadd.f32 %v1101_v54, %v1059_v43  ;;  %v2365_v54 = vld [vmem:[%s2340_s21 + $0x48] sm:$0xff] }
 0x30d   : > { %v1178_v7 = vmul.f32 %v1169_v56, %v1102_v55 }
 0x30f   : > { %v1184_v57 = vsel %vm1180_vm3, %v1178_v7, 0.0 }
 0x310   : > { %v1185_v58 = vadd.f32 %v1184_v57, %v1183_v53 }
 0x312   : > { %v1104_v6 = vpop.f32.mrf.mxu3 }
 0x313   : > { %v1105_v59 = vadd.f32 %v1104_v6, %v1064_v41 }
 0x315   : > { %v1179_v61 = vmul.f32 %v1174_v60, %v1105_v59  ;;  %1135 = vmatpush.msra.mxu0 %v1105_v59 }
 0x317   : > { %v1186_v63 = vsel %vm1180_vm3, %v1179_v61, 0.0  ;;  %1136 = vmatpush.msra.mxu0 %v1102_v55  ;;  %v2374_v61 = vld [vmem:[%s2340_s21 + $0x50] sm:$0xff] }
 0x318   : > { %v1187_v0 = vadd.f32 %v1186_v63, %v1185_v58  ;;  %v2370_v58 = vld [vmem:[%s2340_s21 + $0x58] sm:$0xff] }
 0x319   : > { %1137 = vmatpush.msra.mxu0 %v1099_v50 }
 0x31a   : > { %v1188_v23 = vrot.slane %v1187_v0, 4 }
 0x31b   : > { %1138 = vmatpush.msra.mxu0 %v1096_v10  ;;  %v2354_v10 = vld [vmem:[%s2340_s21 + $0x70] sm:$0xff] }
 0x31c   : > { %1770 = vmatmul.msk.f32.vlgmr.msra.gmra.mxu0 %vm601_vm0, %v1107_v4  ;;  %v1189_v27 = vadd.f32 %v1188_v23, %v1187_v0 }
 0x31e   : > { %v1190_v28 = vrot.slane %v1189_v27, 2 }
 0x320   : > { %v1191_v29 = vadd.f32 %v1190_v28, %v1189_v27 }
 0x322   : > { %v1192_v19 = vrot.slane %v1191_v29, 1 }
 0x324   : > { %1771 = vmatmul.msk.f32.gmra.mxu0 %vm601_vm0, %v1108_v2  ;;  %v1193_v30 = vadd.f32 %v1192_v19, %v1191_v29 }
 0x32c   : > { %1772 = vmatmul.msk.f32.gmra.mxu0 %vm601_vm0, %v1109_v11 }
 0x334   : > { %1773 = vmatmul.msk.f32.gmra.mxu0 %vm601_vm0, %v1110_v12  ;;  %vm1222_vm0 = vcmask 523264  }
 0x399   : > { %v1140_v17 = vpop.f32.mrf.mxu0 }
 0x39a   : > { %1339 = vperm.xlu1 %1839, %v1140_v17   ;;  %1406 = vperm.xlu2 %1838, %v1140_v17  }
 0x3a1   : > { %v1143_v3 = vpop.f32.mrf.mxu0 }
 0x3a2   : > { %1841 = vset.pattern.permute.xlu1 %v1900_v62  ;;  %1840 = vset.pattern.permute.xlu2 %v1902_v22 }
 0x3a3   : > { %1272 = vperm.xlu2 %1840, %v1140_v17   ;;  %1410 = vperm.xlu1 %1841, %v1143_v3  }
 0x3a9   : > { %v1146_v26 = vpop.f32.mrf.mxu0 }
 0x3aa   : > { %1414 = vperm.xlu0 %1844, %v1146_v26  }
 0x3ab   : > { %1842 = vset.pattern.permute.xlu2 %v1901_v5  ;;  %1843 = vset.pattern.permute.xlu1 %v1902_v22 }
 0x3ac   : > { %1343 = vperm.xlu2 %1842, %v1143_v3   ;;  %1276 = vperm.xlu1 %1843, %v1143_v3  }
 0x3b1   : > { %v1149_v18 = vpop.f32.mrf.mxu0 }
 0x3b2   : > { %1848 = vset.pattern.permute.xlu0 %v1901_v5 }
 0x3b3   : > { %1351 = vperm.xlu0 %1848, %v1149_v18  }
 0x3b4   : > { %1846 = vset.pattern.permute.xlu2 %v1900_v62  ;;  %1845 = vset.pattern.permute.xlu1 %v1901_v5 }
 0x3b5   : > { %1347 = vperm.xlu1 %1845, %v1146_v26   ;;  %1418 = vperm.xlu2 %1846, %v1149_v18  }
 0x3bb   : > { %1849 = vset.pattern.permute.xlu0 %v1900_v62 }
 0x3bc   : > { %1439 = vperm.xlu0 %1849, %v1193_v30  }
 0x3bd   : > { %1851 = vset.pattern.permute.xlu1 %v1899_v1  ;;  %1847 = vset.pattern.permute.xlu2 %v1902_v22 }
 0x3be   : > { %1205 = vperm.xlu1 %1851, %v1143_v3   ;;  %1280 = vperm.xlu2 %1847, %v1146_v26  }
 0x3c4   : > { %1854 = vset.pattern.permute.xlu0 %v1901_v5 }
 0x3c5   : > { %1372 = vperm.xlu0 %1854, %v1193_v30  }
 0x3c6   : > { %1852 = vset.pattern.permute.xlu1 %v1902_v22  ;;  %1850 = vset.pattern.permute.xlu2 %v1899_v1 }
 0x3c7   : > { %1284 = vperm.xlu1 %1852, %v1149_v18   ;;  %1200 = vperm.xlu2 %1850, %v1140_v17  }
 0x3cd   : > { %1857 = vset.pattern.permute.xlu0 %v1899_v1 }
 0x3ce   : > { %862 = vperm.xlu0 %1857, %v848_v20   ;;  %v2386_v20 = vld [vmem:[%s2340_s21 + $0x20] sm:$0xff] }
 0x3cf   : > { %1853 = vset.pattern.permute.xlu1 %v1899_v1  ;;  %1210 = vperm.xlu2 %1850, %v1146_v26  }
 0x3d0   : > { %1215 = vperm.xlu1 %1853, %v1149_v18   ;;  %v2383_v18 = vld [vmem:[%s2340_s21 + $0x28] sm:$0xff] }
 0x3d6   : > { %1858 = vset.pattern.permute.xlu0 %v1900_v62 }
 0x3d7   : > { %1855 = vset.pattern.permute.xlu2 %v1902_v22 }
 0x3d8   : > { %1238 = vperm.xlu1 %1853, %v1193_v30   ;;  %1305 = vperm.xlu2 %1855, %v1193_v30  }
 0x3e0   : > { %857 = vperm.xlu1 %1853, %v847_v21   ;;  %1856 = vset.pattern.permute.xlu2 %v1899_v1  ;;  %v2343_v1 = vld [vmem:[%s2340_s21 + $0x68] sm:$0xff] }
 0x3e1   : > { %852 = vperm.xlu2 %1856, %v846_v35  }
 0x3e9   : > { %867 = vperm.xlu2 %1856, %v849_v36  }
 0x3f4   : > { %v1407_v24 = vpop.permute.xlu2 %1406 }
 0x3f5   : > { %v1421_v44 = vmul.f32 %v2346_v37, %v1407_v24 }
 0x3f7   : > { %v1425_v48 = vsel %vm1222_vm0, %v1421_v44, 0.0 }
 0x3fd   : > { %v1273_v25 = vpop.permute.xlu2 %1272 }
 0x406   : > { %v1344_v31 = vpop.permute.xlu2 %1343 }
 0x407   : > { %v1355_v6 = vmul.f32 %v2365_v54, %v1344_v31 }
 0x409   : > { %v1359_v4 = vsel %vm1222_vm0, %v1355_v6, 0.0 }
 0x40c   : > { %v1340_v32 = vpop.permute.xlu1 %1339 }
 0x40d   : > { %v1354_v7 = vmul.f32 %v2361_v9, %v1340_v32 }
 0x40f   : > { %v1419_v33 = vpop.permute.xlu2 %1418  ;;  %v1358_v62 = vsel %vm1222_vm0, %v1354_v7, 0.0 }
 0x410   : > { %v1424_v49 = vmul.f32 %v2351_v45, %v1419_v33  ;;  %v1360_v12 = vadd.f32 %v1359_v4, %v1358_v62  ;;  %v1287_v33 = vmul.f32 %v2386_v20, %v1273_v25 }
 0x412   : > { %v1430_v55 = vsel %vm1222_vm0, %v1424_v49, 0.0 }
 0x415   : > { %v1411_v34 = vpop.permute.xlu1 %1410 }
 0x416   : > { %v1422_v41 = vmul.f32 %v2343_v1, %v1411_v34 }
 0x418   : > { %v1281_v43 = vpop.permute.xlu2 %1280  ;;  %v1426_v46 = vsel %vm1222_vm0, %v1422_v41, 0.0  ;;  %v2393_v41 = vld [vmem:[%s2340_s21 + $0x30] sm:$0xff] }
 0x419   : > { %v1427_v51 = vadd.f32 %v1426_v46, %v1425_v48  ;;  %v1291_v48 = vsel %vm1222_vm0, %v1287_v33, 0.0  ;;  %v1289_v49 = vmul.f32 %v2393_v41, %v1281_v43 }
 0x41c   : > { %v1415_v47 = vpop.permute.xlu0 %1414 }
 0x41d   : > { %v1423_v50 = vmul.f32 %v2354_v10, %v1415_v47  ;;  %v2397_v47 = vld [vmem:[%s2340_s21 + $0x8] sm:$0xff] }
 0x41e   : > { %v1277_v52 = vpop.permute.xlu1 %1276 }
 0x41f   : > { %v1428_v8 = vsel %vm1222_vm0, %v1423_v50, 0.0  ;;  %v1288_v36 = vmul.f32 %v2383_v18, %v1277_v52  ;;  %v2402_v52 = vld [vmem:[%s2340_s21 + $0x38] sm:$0xff] }
 0x420   : > { %v1429_v53 = vadd.f32 %v1428_v8, %v1427_v51  ;;  %v2405_v8 = vld [vmem:[%s2340_s21] sm:$0xff] }
 0x421   : > { %v1201_v56 = vpop.permute.xlu2 %1200  ;;  %v1292_v44 = vsel %vm1222_vm0, %v1288_v36, 0.0 }
 0x422   : > { %v1431_v57 = vadd.f32 %v1430_v55, %v1429_v53  ;;  %v1293_v25 = vadd.f32 %v1292_v44, %v1291_v48 }
 0x424   : > { %v1432_v59 = vrot.slane %v1431_v57, 4 }
 0x425   : > { %v1352_v60 = vpop.permute.xlu0 %1351 }
 0x426   : > { %v1357_v5 = vmul.f32 %v2370_v58, %v1352_v60  ;;  %v1433_v63 = vadd.f32 %v1432_v59, %v1431_v57  ;;  %v1294_v59 = vsel %vm1222_vm0, %v1289_v49, 0.0  ;;  %v1218_v60 = vmul.f32 %v1201_v56, %v2405_v8 }
 0x427   : > { %v1348_v0 = vpop.permute.xlu1 %1347 }
 0x428   : > { %v1356_v2 = vmul.f32 %v2374_v61, %v1348_v0  ;;  %v1434_v11 = vrot.slane %v1433_v63, 2  ;;  %v1363_v3 = vsel %vm1222_vm0, %v1357_v5, 0.0  ;;  %v1295_v0 = vadd.f32 %v1294_v59, %v1293_v25 }
 0x429   : > { %v1211_v17 = vpop.permute.xlu2 %1210 }
 0x42a   : > { %v1361_v22 = vsel %vm1222_vm0, %v1356_v2, 0.0  ;;  %v1435_v23 = vadd.f32 %v1434_v11, %v1433_v63  ;;  %v2418_v63 = vld [vmem:[%s2340_s21 + $0x10] sm:$0xff] }
 0x42b   : > { %v1362_v26 = vadd.f32 %v1361_v22, %v1360_v12  ;;  %v1223_v22 = vsel %vm1222_vm0, %v1218_v60, 0.0 }
 0x42c   : > { %v1436_v27 = vrot.slane %v1435_v23, 1 }
 0x42d   : > { %v1364_v28 = vadd.f32 %v1363_v3, %v1362_v26 }
 0x42e   : > { %v1440_v29 = vpop.permute.xlu0 %1439  ;;  %v1437_v19 = vadd.f32 %v1436_v27, %v1435_v23  ;;  %v1220_v23 = vmul.f32 %v1211_v17, %v2418_v63 }
 0x42f   : > { %v1365_v30 = vrot.slane %v1364_v28, 4 }
 0x430   : > { %v1442_v21 = vadd.f32 %v1440_v29, %v1437_v19  ;;  %v1206_v35 = vpop.permute.xlu1 %1205 }
 0x431   : > { %v1366_v24 = vadd.f32 %v1365_v30, %v1364_v28  ;;  %v1219_v53 = vmul.f32 %v1206_v35, %v2397_v47  ;;  %v1226_v35 = vsel %vm1222_vm0, %v1220_v23, 0.0 }
 0x432   : > { %v1789_v31 = vmul.f32 -1.442695, %v1442_v21  ;;  %v2389_v32 = vpop.permute.xlu2 %1305 }
 0x433   : > { %v1367_v34 = vrot.slane %v1366_v24, 2  ;;  %v1224_v11 = vsel %vm1222_vm0, %v1219_v53, 0.0 }
 0x434   : > { %1875 = vpow2.f32 %v1789_v31  ;;  %v1225_v26 = vadd.f32 %v1224_v11, %v1223_v22 }
 0x435   : > { %v1368_v46 = vadd.f32 %v1367_v34, %v1366_v24 }
 0x436   : > { %v1227_v33 = vadd.f32 %v1226_v35, %v1225_v26 }
 0x437   : > { %v1373_v50 = vpop.permute.xlu0 %1372  ;;  %v1369_v51 = vrot.slane %v1368_v46, 1 }
 0x439   : > { %v1370_v55 = vadd.f32 %v1369_v51, %v1368_v46  ;;  %v1285_v7 = vpop.permute.xlu1 %1284 }
 0x43a   : > { %v1876_v57 = vpop.eup %1875  ;;  %v1290_v6 = vmul.f32 %v2402_v52, %v1285_v7 }
 0x43b   : > { %v1446_v43 = vadd.f32 1.0, %v1876_v57  ;;  %v1375_v62 = vadd.f32 %v1373_v50, %v1370_v55  ;;  %v853_v5 = vpop.permute.xlu2 %852 }
 0x43c   : > { %v1296_v4 = vsel %vm1222_vm0, %v1290_v6, 0.0  ;;  %v900_v2 = vadd.f32 %v2275_v38, %v853_v5  ;;  %v929_v56 = vadd.f32 %v2305_v13, %v853_v5  ;;  %v2429_v38 = vld [vmem:[%s2340_s21 + $0x18] sm:$0xff] }
 0x43d   : > { %1877 = vrcp.f32 %v1446_v43  ;;  %v1784_v12 = vmul.f32 -1.442695, %v1375_v62  ;;  %v1297_v3 = vadd.f32 %v1296_v4, %v1295_v0  ;;  %v1456_v50 = vand.u32 2147483647, %v1446_v43 }
 0x43e   : > { %940 = vst [vmem:[%s2415_s26] sm:$0xff] %v900_v2  ;;  %v1458_v51 = vand.u32 2147483648, %v1446_v43  ;;  %vm1452_vm5 = vweird.f32 %v1446_v43 }
 0x43f   : > { %941 = vst [vmem:[%s2415_s26 + $0x8] sm:$0xff] %v929_v56  ;;  %1879 = vpow2.f32 %v1784_v12  ;;  %v1298_v27 = vrot.slane %v1297_v3, 4  ;;  %vm1457_vm7 = vcmp.eq.f32.partialorder %v1456_v50, 8.507059e+37 }
 0x440   : > { %v863_v28 = vpop.permute.xlu0 %862  ;;  %v1459_v59 = vor.u32 1.1754944e-38, %v1458_v51 }
 0x441   : > { %v906_v13 = vadd.f32 %v2279_v40, %v863_v28  ;;  %v935_v29 = vadd.f32 %v2309_v15, %v863_v28  ;;  %v1299_v19 = vadd.f32 %v1298_v27, %v1297_v3 }
 0x442   : > { %v1216_v30 = vpop.permute.xlu1 %1215 }
 0x443   : > { %v1878_v21 = vpop.eup %1877  ;;  %944 = vst [vmem:[%s2415_s26 + $0x20] sm:$0xff] %v906_v13  ;;  %v1221_v17 = vmul.f32 %v1216_v30, %v2429_v38  ;;  %v868_v36 = vpop.permute.xlu2 %867  ;;  %v1300_v31 = vrot.slane %v1299_v19, 2 }
 0x444   : > { %v1448_v24 = vmul.f32 %v1878_v21, %v1446_v43  ;;  %945 = vst [vmem:[%s2415_s26 + $0x28] sm:$0xff] %v935_v29  ;;  %v909_v34 = vadd.f32 %v2281_v42, %v868_v36  ;;  %v938_v15 = vadd.f32 %v2311_v16, %v868_v36  ;;  %vm1453_vm4 = vweird.f32 %v1878_v21 }
 0x445   : > { %v1228_v40 = vsel %vm1222_vm0, %v1221_v17, 0.0  ;;  %v1880_v44 = vpop.eup %1879  ;;  %v1301_v48 = vadd.f32 %v1300_v31, %v1299_v19  ;;  %vm1454_vm6 = vmor %vm1452_vm5, %vm1453_vm4 }
 0x446   : > { %v1449_v46 = vsub.f32 1.0, %v1448_v24  ;;  %v1229_v49 = vadd.f32 %v1228_v40, %v1227_v33  ;;  %946 = vst [vmem:[%s2415_s26 + $0x30] sm:$0xff] %v909_v34  ;;  %v2441_v25 = vadd.f32 1.0, %v1880_v44 }
 0x447   : > { %947 = vst [vmem:[%s2415_s26 + $0x38] sm:$0xff] %v938_v15  ;;  %v1302_v55 = vrot.slane %v1301_v48, 1 }
 0x448   : > { %v1450_v53 = vmul.f32 %v1878_v21, %v1449_v46  ;;  %v1230_v7 = vrot.slane %v1229_v49, 4  ;;  %1881 = vrcp.f32 %v2441_v25  ;;  %v1391_v29 = vand.u32 2147483648, %v2441_v25 }
 0x449   : > { %v1303_v57 = vadd.f32 %v1302_v55, %v1301_v48  ;;  %vm1385_vm9 = vweird.f32 %v2441_v25 }
 0x44a   : > { %v1451_v42 = vadd.f32 %v1878_v21, %v1450_v53  ;;  %v1231_v16 = vadd.f32 %v1230_v7, %v1229_v49  ;;  %v1239_v6 = vpop.permute.xlu1 %1238  ;;  %v1392_v36 = vor.u32 1.1754944e-38, %v1391_v29  ;;  %v1470_v29 = vld [vmem:[%s2580_s13 + $0x18] sm:$0xff] }
 0x44b   : > { %v1308_v60 = vadd.f32 %v2389_v32, %v1303_v57 }
 0x44c   : > { %v1232_v62 = vrot.slane %v1231_v16, 2  ;;  %v1455_v5 = vsel %vm1454_vm6, %v1878_v21, %v1451_v42 }
 0x44d   : > { %v1460_v0 = vsel %vm1457_vm7, %v1459_v59, %v1455_v5  ;;  %v1779_v4 = vmul.f32 -1.442695, %v1308_v60 }
 0x44e   : > { %v1233_v2 = vadd.f32 %v1232_v62, %v1231_v16  ;;  %v1462_v56 = vsub.f32 1.0, %v1460_v0  ;;  %v1882_v11 = vpop.eup %1881 }
 0x44f   : > { %v1381_v12 = vmul.f32 %v1882_v11, %v2441_v25  ;;  %1883 = vpow2.f32 %v1779_v4  ;;  %vm1386_vm8 = vweird.f32 %v1882_v11 }
 0x450   : > { %v1234_v3 = vrot.slane %v1233_v2, 1  ;;  %v1466_v43 = vmul.f32 %v2351_v45, %v1462_v56  ;;  %v1465_v28 = vmul.f32 %v2354_v10, %v1462_v56  ;;  %v1389_v45 = vand.u32 2147483647, %v2441_v25  ;;  %vm2458_vm10 = vmor %vm1385_vm9, %vm1386_vm8 }
 0x451   : > { %v1382_v22 = vsub.f32 1.0, %v1381_v12  ;;  %v1464_v30 = vmul.f32 %v2343_v1, %v1462_v56  ;;  %v1463_v17 = vmul.f32 %v2346_v37, %v1462_v56  ;;  %v1791_v12 = vld [vmem:[%s2580_s13 + $0x28] sm:$0xff] }
 0x452   : > { %v1235_v23 = vadd.f32 %v1234_v3, %v1233_v2  ;;  %v858_v26 = vpop.permute.xlu1 %857  ;;  %1471 = vmatpush.msra.mxu1 %v1466_v43  ;;  %1509 = vmatpush.msra.mxu2 %v1466_v43  ;;  %vm1390_vm11 = vcmp.eq.f32.partialorder %v1389_v45, 8.507059e+37  ;;  %v1799_v3 = vld [vmem:[%s2580_s13 + $0x48] sm:$0xff] }
 0x453   : > { %v903_v32 = vadd.f32 %v2277_v39, %v858_v26  ;;  %v932_v27 = vadd.f32 %v2307_v14, %v858_v26  ;;  %v1383_v13 = vmul.f32 %v1882_v11, %v1382_v22  ;;  %1548 = vmatpush.msra.mxu3 %v1466_v43  ;;  %1587 = vmatpush.msrb.mxu0 %v1466_v43  ;;  %v1468_v43 = vld [vmem:[%s2580_s13 + $0x8] sm:$0xff]  ;;  %v1800_v26 = vld [vmem:[%s2580_s13 + $0x50] sm:$0xff] }
 0x454   : > { %v1241_v19 = vadd.f32 %v1239_v6, %v1235_v23  ;;  %1472 = vmatpush.msra.mxu1 %v1465_v28  ;;  %1510 = vmatpush.msra.mxu2 %v1465_v28  ;;  %v1807_v22 = vld [vmem:[%s2580_s13 + $0x68] sm:$0xff]  ;;  %v1792_v23 = vld [vmem:[%s2580_s13 + $0x30] sm:$0xff] }
 0x455   : > { %942 = vst [vmem:[%s2415_s26 + $0x10] sm:$0xff] %v903_v32  ;;  %v1884_v39 = vpop.eup %1883  ;;  %v1384_v21 = vadd.f32 %v1882_v11, %v1383_v13  ;;  %1549 = vmatpush.msra.mxu3 %v1465_v28  ;;  %1588 = vmatpush.msrb.mxu0 %v1465_v28  ;;  %v1469_v32 = vld [vmem:[%s2580_s13 + $0x10] sm:$0xff]  ;;  %v1793_v28 = vld [vmem:[%s2580_s13 + $0x38] sm:$0xff] }
 0x456   : > { %v1774_v14 = vmul.f32 -1.442695, %v1241_v19  ;;  %943 = vst [vmem:[%s2415_s26 + $0x18] sm:$0xff] %v932_v27  ;;  %v1312_v35 = vadd.f32 1.0, %v1884_v39  ;;  %1473 = vmatpush.msra.mxu1 %v1464_v30  ;;  %1511 = vmatpush.msra.mxu2 %v1464_v30  ;;  %v1808_v27 = vld [vmem:[%s2580_s13 + $0x70] sm:$0xff]  ;;  %v1801_v13 = vld [vmem:[%s2580_s13 + $0x58] sm:$0xff] }
 0x457   : > { %1550 = vmatpush.msra.mxu3 %v1464_v30  ;;  %1589 = vmatpush.msrb.mxu0 %v1464_v30  ;;  %v1388_v1 = vsel %vm2458_vm10, %v1882_v11, %v1384_v21  ;;  %v1809_v19 = vld [vmem:[%s2580_s13 + $0x78] sm:$0xff] }
 0x458   : > { %1885 = vpow2.f32 %v1774_v14  ;;  %1474 = vmatpush.msra.mxu1 %v1463_v17  ;;  %1512 = vmatpush.msra.mxu2 %v1463_v17  ;;  %v1393_v24 = vsel %vm1390_vm11, %v1392_v36, %v1388_v1  ;;  %v1324_v49 = vand.u32 2147483648, %v1312_v35  ;;  %v1322_v51 = vand.u32 2147483647, %v1312_v35 }
 0x459   : > { %1887 = vrcp.f32 %v1312_v35  ;;  %1551 = vmatpush.msra.mxu3 %v1463_v17  ;;  %1590 = vmatpush.msrb.mxu0 %v1463_v17  ;;  %v1395_v31 = vsub.f32 1.0, %v1393_v24  ;;  %vm1318_vm13 = vweird.f32 %v1312_v35 }
 0x45a   : > { %v1325_v25 = vor.u32 1.1754944e-38, %v1324_v49  ;;  %vm1323_vm15 = vcmp.eq.f32.partialorder %v1322_v51, 8.507059e+37 }
 0x45b   : > { %v1399_v33 = vmul.f32 %v2370_v58, %v1395_v31  ;;  %v1398_v15 = vmul.f32 %v2374_v61, %v1395_v31  ;;  %v1397_v46 = vmul.f32 %v2365_v54, %v1395_v31  ;;  %v1396_v58 = vmul.f32 %v2361_v9, %v1395_v31 }
 0x45d   : > { %1475 = vmatpush.msra.mxu1 %v1399_v33  ;;  %1513 = vmatpush.msra.mxu2 %v1399_v33 }
 0x45e   : > { %v1886_v34 = vpop.eup %1885  ;;  %1552 = vmatpush.msra.mxu3 %v1399_v33  ;;  %1591 = vmatpush.msrb.mxu0 %v1399_v33 }
 0x45f   : > { %v1888_v40 = vpop.eup %1887  ;;  %v1245_v37 = vadd.f32 1.0, %v1886_v34  ;;  %1476 = vmatpush.msra.mxu1 %v1398_v15  ;;  %1514 = vmatpush.msra.mxu2 %v1398_v15 }
 0x460   : > { %v1314_v44 = vmul.f32 %v1888_v40, %v1312_v35  ;;  %1553 = vmatpush.msra.mxu3 %v1398_v15  ;;  %1592 = vmatpush.msrb.mxu0 %v1398_v15  ;;  %vm1319_vm12 = vweird.f32 %v1888_v40 }
 0x461   : > { %1889 = vrcp.f32 %v1245_v37  ;;  %1477 = vmatpush.msra.mxu1 %v1397_v46  ;;  %1515 = vmatpush.msra.mxu2 %v1397_v46  ;;  %vm1320_vm14 = vmor %vm1318_vm13, %vm1319_vm12  ;;  %v1257_v57 = vand.u32 2147483648, %v1245_v37  ;;  %v1255_v59 = vand.u32 2147483647, %v1245_v37  ;;  %vm1251_vm2 = vweird.f32 %v1245_v37 }
 0x462   : > { %v1315_v48 = vsub.f32 1.0, %v1314_v44  ;;  %1554 = vmatpush.msra.mxu3 %v1397_v46  ;;  %1593 = vmatpush.msrb.mxu0 %v1397_v46 }
 0x463   : > { %1478 = vmatpush.msra.mxu1 %v1396_v58  ;;  %1516 = vmatpush.msra.mxu2 %v1396_v58  ;;  %v1258_v5 = vor.u32 1.1754944e-38, %v1257_v57  ;;  %vm1256_vm4 = vcmp.eq.f32.partialorder %v1255_v59, 8.507059e+37 }
 0x464   : > { %v1316_v50 = vmul.f32 %v1888_v40, %v1315_v48  ;;  %1555 = vmatpush.msra.mxu3 %v1396_v58  ;;  %1594 = vmatpush.msrb.mxu0 %v1396_v58 }
 0x466   : > { %v1317_v61 = vadd.f32 %v1888_v40, %v1316_v50 }
 0x467   : > { %v1890_v54 = vpop.eup %1889 }
 0x468   : > { %v1321_v53 = vsel %vm1320_vm14, %v1888_v40, %v1317_v61  ;;  %v1247_v55 = vmul.f32 %v1890_v54, %v1245_v37  ;;  %vm1252_vm1 = vweird.f32 %v1890_v54 }
 0x469   : > { %v1326_v7 = vsel %vm1323_vm15, %v1325_v25, %v1321_v53  ;;  %vm1253_vm3 = vmor %vm1251_vm2, %vm1252_vm1 }
 0x46a   : > { %v1328_v42 = vsub.f32 1.0, %v1326_v7  ;;  %v1248_v9 = vsub.f32 1.0, %v1247_v55 }
 0x46c   : > { %v1332_v16 = vmul.f32 %v2402_v52, %v1328_v42  ;;  %v1249_v6 = vmul.f32 %v1890_v54, %v1248_v9  ;;  %v1331_v62 = vmul.f32 %v2393_v41, %v1328_v42  ;;  %v1330_v0 = vmul.f32 %v2383_v18, %v1328_v42 }
 0x46d   : > { %v1329_v2 = vmul.f32 %v2386_v20, %v1328_v42 }
 0x46e   : > { %v1250_v60 = vadd.f32 %v1890_v54, %v1249_v6  ;;  %1479 = vmatpush.msra.mxu1 %v1332_v16  ;;  %1517 = vmatpush.msra.mxu2 %v1332_v16 }
 0x46f   : > { %1556 = vmatpush.msra.mxu3 %v1332_v16  ;;  %1595 = vmatpush.msrb.mxu0 %v1332_v16 }
 0x470   : > { %1480 = vmatpush.msra.mxu1 %v1331_v62  ;;  %1518 = vmatpush.msra.mxu2 %v1331_v62  ;;  %v1254_v4 = vsel %vm1253_vm3, %v1890_v54, %v1250_v60 }
 0x471   : > { %1557 = vmatpush.msra.mxu3 %v1331_v62  ;;  %1596 = vmatpush.msrb.mxu0 %v1331_v62  ;;  %v1259_v52 = vsel %vm1256_vm4, %v1258_v5, %v1254_v4 }
 0x472   : > { %1481 = vmatpush.msra.mxu1 %v1330_v0  ;;  %1519 = vmatpush.msra.mxu2 %v1330_v0  ;;  %v1261_v56 = vsub.f32 1.0, %v1259_v52 }
 0x473   : > { %1558 = vmatpush.msra.mxu3 %v1330_v0  ;;  %1597 = vmatpush.msrb.mxu0 %v1330_v0 }
 0x474   : > { %1482 = vmatpush.msra.mxu1 %v1329_v2  ;;  %1520 = vmatpush.msra.mxu2 %v1329_v2  ;;  %v1265_v41 = vmul.f32 %v1261_v56, %v2429_v38  ;;  %v1264_v18 = vmul.f32 %v1261_v56, %v2418_v63  ;;  %v1263_v11 = vmul.f32 %v1261_v56, %v2397_v47  ;;  %v1790_v38 = vld [vmem:[%s2580_s13 + $0x20] sm:$0xff] }
 0x475   : > { %1559 = vmatpush.msra.mxu3 %v1329_v2  ;;  %1598 = vmatpush.msrb.mxu0 %v1329_v2  ;;  %v1262_v20 = vmul.f32 %v1261_v56, %v2405_v8  ;;  %v1798_v63 = vld [vmem:[%s2580_s13 + $0x40] sm:$0xff] }
 0x476   : > { %1483 = vmatpush.msra.mxu1 %v1265_v41  ;;  %1521 = vmatpush.msra.mxu2 %v1265_v41  ;;  %v1467_v47 = vld [vmem:[%s2580_s13] sm:$0xff] }
 0x477   : > { %1560 = vmatpush.msra.mxu3 %v1265_v41  ;;  %1599 = vmatpush.msrb.mxu0 %v1265_v41  ;;  %v1806_v8 = vld [vmem:[%s2580_s13 + $0x60] sm:$0xff] }
 0x478   : > { %1484 = vmatpush.msra.mxu1 %v1264_v18  ;;  %1522 = vmatpush.msra.mxu2 %v1264_v18 }
 0x479   : > { %1561 = vmatpush.msra.mxu3 %v1264_v18  ;;  %1600 = vmatpush.msrb.mxu0 %v1264_v18 }
 0x47a   : > { %1485 = vmatpush.msra.mxu1 %v1263_v11  ;;  %1523 = vmatpush.msra.mxu2 %v1263_v11 }
 0x47b   : > { %1562 = vmatpush.msra.mxu3 %v1263_v11  ;;  %1601 = vmatpush.msrb.mxu0 %v1263_v11 }
 0x47c   : > { %1486 = vmatpush.msra.mxu1 %v1262_v20  ;;  %1524 = vmatpush.msra.mxu2 %v1262_v20 }
 0x47d   : > { %1563 = vmatpush.msra.mxu3 %v1262_v20  ;;  %1602 = vmatpush.msrb.mxu0 %v1262_v20 }
 0x47e   : > { %1525 = vmatmul.f32.vlgmr.msra.gmra.mxu2 %v1790_v38  ;;  %1564 = vmatmul.f32.vlgmr.msra.gmra.mxu3 %v1798_v63 }
 0x47f   : > { %1487 = vmatmul.f32.vlgmr.msra.gmra.mxu1 %v1467_v47  ;;  %1603 = vmatmul.f32.vlgmr.msrb.gmra.mxu0 %v1806_v8 }
 0x486   : > { %1528 = vmatmul.f32.gmra.mxu2 %v1791_v12  ;;  %1567 = vmatmul.f32.gmra.mxu3 %v1799_v3 }
 0x487   : > { %1490 = vmatmul.f32.gmra.mxu1 %v1468_v43  ;;  %1606 = vmatmul.f32.gmra.mxu0 %v1807_v22 }
 0x48e   : > { %1531 = vmatmul.f32.gmra.mxu2 %v1792_v23  ;;  %1570 = vmatmul.f32.gmra.mxu3 %v1800_v26 }
 0x48f   : > { %1493 = vmatmul.f32.gmra.mxu1 %v1469_v32  ;;  %1609 = vmatmul.f32.gmra.mxu0 %v1808_v27 }
 0x496   : > { %1534 = vmatmul.f32.gmra.mxu2 %v1793_v28  ;;  %1573 = vmatmul.f32.gmra.mxu3 %v1801_v13 }
 0x497   : > { %1496 = vmatmul.f32.gmra.mxu1 %v1470_v29  ;;  %1612 = vmatmul.f32.gmra.mxu0 %v1809_v19 }
 0x4fc   : > { %v1488_v45 = vpop.f32.mrf.mxu1  ;;  %v1604_v30 = vpop.f32.mrf.mxu0 }
 0x4fd   : > { %1500 = vst.msk [vmem:[%s2530_s20] sm:$0xff] %vm1222_vm0, %v1488_v45 }
 0x4fe   : > { %1810 = vst.msk [vmem:[%s2530_s20 + $0x60] sm:$0xff] %vm1222_vm0, %v1604_v30 }
 0x501   : > { %v1526_v39 = vpop.f32.mrf.mxu2  ;;  %v1565_v21 = vpop.f32.mrf.mxu3 }
 0x502   : > { %1794 = vst.msk [vmem:[%s2530_s20 + $0x20] sm:$0xff] %vm1222_vm0, %v1526_v39 }
 0x503   : > { %1802 = vst.msk [vmem:[%s2530_s20 + $0x40] sm:$0xff] %vm1222_vm0, %v1565_v21 }
 0x504   : > { %v1491_v14 = vpop.f32.mrf.mxu1  ;;  %v1607_v10 = vpop.f32.mrf.mxu0 }
 0x505   : > { %1501 = vst.msk [vmem:[%s2530_s20 + $0x8] sm:$0xff] %vm1222_vm0, %v1491_v14 }
 0x506   : > { %1811 = vst.msk [vmem:[%s2530_s20 + $0x68] sm:$0xff] %vm1222_vm0, %v1607_v10 }
 0x509   : > { %v1529_v35 = vpop.f32.mrf.mxu2  ;;  %v1568_v17 = vpop.f32.mrf.mxu3 }
 0x50a   : > { %1795 = vst.msk [vmem:[%s2530_s20 + $0x28] sm:$0xff] %vm1222_vm0, %v1529_v35 }
 0x50b   : > { %1803 = vst.msk [vmem:[%s2530_s20 + $0x48] sm:$0xff] %vm1222_vm0, %v1568_v17 }
 0x50c   : > { %v1494_v36 = vpop.f32.mrf.mxu1  ;;  %v1610_v1 = vpop.f32.mrf.mxu0 }
 0x50d   : > { %1502 = vst.msk [vmem:[%s2530_s20 + $0x10] sm:$0xff] %vm1222_vm0, %v1494_v36 }
 0x50e   : > { %1812 = vst.msk [vmem:[%s2530_s20 + $0x70] sm:$0xff] %vm1222_vm0, %v1610_v1 }
 0x511   : > { %v1532_v24 = vpop.f32.mrf.mxu2  ;;  %v1571_v31 = vpop.f32.mrf.mxu3 }
 0x512   : > { %1796 = vst.msk [vmem:[%s2530_s20 + $0x30] sm:$0xff] %vm1222_vm0, %v1532_v24 }
 0x513   : > { %1804 = vst.msk [vmem:[%s2530_s20 + $0x50] sm:$0xff] %vm1222_vm0, %v1571_v31 }
 0x514   : > { %v1497_v33 = vpop.f32.mrf.mxu1  ;;  %v1613_v34 = vpop.f32.mrf.mxu0 }
 0x515   : > { %1503 = vst.msk [vmem:[%s2530_s20 + $0x18] sm:$0xff] %vm1222_vm0, %v1497_v33 }
 0x516   : > { %1813 = vst.msk [vmem:[%s2530_s20 + $0x78] sm:$0xff] %vm1222_vm0, %v1613_v34 }
 0x519   : > { %v1535_v40 = vpop.f32.mrf.mxu2  ;;  %v1574_v37 = vpop.f32.mrf.mxu3 }
 0x51a   : > { %1797 = vst.msk [vmem:[%s2530_s20 + $0x38] sm:$0xff] %vm1222_vm0, %v1535_v40 }
 0x51b   : > { %1805 = vst.msk [vmem:[%s2530_s20 + $0x58] sm:$0xff] %vm1222_vm0, %v1574_v37 }
 0x51c PF: > { %s29_s23 = sadd.s32 1, %s1897_s23  }
 0x51d   : > { %p26_p4 = scmp.ge.s32.totalorder %s29_s23, 4  }
 0x51f   :  { %28 = sbr.rel (!%p26_p4) target bundleno = 3 (0x3), region = 137 }

</bundles_post_ra>
